<compile_context>
chip_gen: v5e
topology: v5e:2x2
jax: 0.10.0
libtpu: 0.0.40
codegen_flags: <defaults>
</compile_context>

<pallas_src>
import functools

import numpy as np

import jax
import jax.numpy as jnp
from jax import lax
from jax.experimental import pallas as pl
from jax.experimental.pallas import tpu as pltpu


# ----------------------------------------------------------------------------
# Fused whole-network kernel (runs once: grid=(1,))
# ----------------------------------------------------------------------------
def _fused_cnn_kernel(*refs, batch, conv_dims, n_fc):
    """Whole CustomCNN forward in one kernel invocation.

    Row-flat activation layout:  act[h * batch + n, w * C + c] == NHWC[n, h, w, c].
    refs = [x, (wk, brow, hsel, vsel) * n_conv, (w, b) * (n_fc + 1)]   # inputs
           + [out]                                                      # output
           + [pad_scratch * n_conv, flat_scratch]                       # scratch
    """
    n_conv = len(conv_dims)
    N = batch

    it = iter(refs)
    x_ref = next(it)
    conv_ops = [tuple(next(it) for _ in range(4)) for _ in range(n_conv)]
    fc_ops = [tuple(next(it) for _ in range(2)) for _ in range(n_fc + 1)]
    o_ref = next(it)
    pad_refs = [next(it) for _ in range(n_conv)]
    flat_ref = next(it)

    act = x_ref[...]  # (H0*N, W0*Cin0), rows ordered (h, n)

    for li, (H, W, Cin, Cout) in enumerate(conv_dims):
        wk_ref, brow_ref, hsel_ref, vsel_ref = conv_ops[li]
        pad_ref = pad_refs[li]
        WCin, WCout = W * Cin, W * Cout

        # 'same' padding along H: zero border row-blocks in VMEM scratch.
        pad_ref[...] = jnp.zeros(((H + 2) * N, WCin), jnp.float32)
        pad_ref[N:(H + 1) * N, :] = act

        # 3x3 conv == 3 lane-dense MXU matmuls; kw shifts + W 'same' padding are
        # folded offline into block-banded (W*Cin, W*Cout) matrices (one per kh).
        acc = jnp.zeros((H * N, WCout), jnp.float32)
        for kh in range(3):
            acc = acc + jnp.dot(
                pad_ref[kh * N:(kh + H) * N, :], wk_ref[kh],
                preferred_element_type=jnp.float32)
        y = jnp.maximum(acc + brow_ref[...], 0.0)  # bias + ReLU, (H*N, W*Cout)

        # 2x2/2 max-pool: even/odd column selection (lanes) then even/odd
        # row-block selection (sublanes), both via precomputed one-hot matrices.
        yh = jnp.maximum(
            jnp.dot(y, hsel_ref[0], preferred_element_type=jnp.float32),
            jnp.dot(y, hsel_ref[1], preferred_element_type=jnp.float32))
        act = jnp.maximum(
            jnp.dot(vsel_ref[0], yh, preferred_element_type=jnp.float32),
            jnp.dot(vsel_ref[1], yh, preferred_element_type=jnp.float32))
        # act: (H/2*N, W/2*Cout) in the same row-flat layout -> next layer input.

    # ---- FC head: per-sample (h, w, c) flatten is folded into fc1 as one partial
    # ---- matmul per pooled row-block (no transpose / reshape anywhere).
    Hl, Wl, _, Cl = conv_dims[-1]
    H2l = Hl // 2
    WCl = (Wl // 2) * Cl
    flat_ref[...] = act  # (H2l*N, W2l*Cl), rows ordered (hp, n)

    fw1_ref, fb1_ref = fc_ops[0]
    h = jnp.zeros((N, fw1_ref.shape[1]), jnp.float32)
    for hp in range(H2l):
        h = h + jnp.dot(
            flat_ref[hp * N:(hp + 1) * N, :],
            fw1_ref[hp * WCl:(hp + 1) * WCl, :],
            preferred_element_type=jnp.float32)
    h = jnp.maximum(h + fb1_ref[...], 0.0)
    # TODO(synk): nn.Dropout(0.5) is identity at inference; training-mode dropout not implemented.

    for w_ref, b_ref in fc_ops[1:-1]:
        h = jnp.maximum(
            jnp.dot(h, w_ref[...], preferred_element_type=jnp.float32) + b_ref[...],
            0.0)

    wo_ref, bo_ref = fc_ops[-1]
    o_ref[...] = (jnp.dot(h, wo_ref[...], preferred_element_type=jnp.float32)
                  + bo_ref[...]).astype(o_ref.dtype)


# ----------------------------------------------------------------------------
# Host-side (offline) operand preparation
# ----------------------------------------------------------------------------
def _conv_row_operands(w_hwio, b, width):
    """Fold the 3x3 kw structure + 'same' W-padding + bias + horizontal pool into
    constant matrices for the row-flat layout."""
    w_np = np.asarray(w_hwio, dtype=np.float32)   # (3, 3, Cin, Cout)
    b_np = np.asarray(b, dtype=np.float32)
    c_in, c_out = w_np.shape[2], w_np.shape[3]
    w2 = width // 2

    # Block-banded per-kh matrices: wk[kh][wi*Cin+ci, wo*Cout+co] = w[kh, wi-wo+1, ci, co]
    wk = np.zeros((3, width * c_in, width * c_out), np.float32)
    for kh in range(3):
        for wo in range(width):
            for kw in range(3):
                wi = wo + kw - 1
                if 0 <= wi < width:
                    wk[kh, wi * c_in:(wi + 1) * c_in,
                       wo * c_out:(wo + 1) * c_out] = w_np[kh, kw]

    brow = np.tile(b_np, width).reshape(1, width * c_out)

    # Even/odd column (w) selection for the horizontal 2x pool.
    hsel = np.zeros((2, width * c_out, w2 * c_out), np.float32)
    eye = np.eye(c_out, dtype=np.float32)
    for wp in range(w2):
        hsel[0, (2 * wp) * c_out:(2 * wp + 1) * c_out,
             wp * c_out:(wp + 1) * c_out] = eye
        hsel[1, (2 * wp + 1) * c_out:(2 * wp + 2) * c_out,
             wp * c_out:(wp + 1) * c_out] = eye
    return wk, brow, hsel


def _vpool_select(height, batch):
    """Even/odd row-block selection matrices for the vertical 2x pool."""
    h2 = height // 2
    vsel = np.zeros((2, h2 * batch, height * batch), np.float32)
    eye = np.eye(batch, dtype=np.float32)
    for hp in range(h2):
        vsel[0, hp * batch:(hp + 1) * batch,
             (2 * hp) * batch:(2 * hp + 1) * batch] = eye
        vsel[1, hp * batch:(hp + 1) * batch,
             (2 * hp + 1) * batch:(2 * hp + 2) * batch] = eye
    return vsel


def prepare(params, batch, input_shape):
    """Build the kernel operand list (weights in row-matmul form + pool constants)."""
    operands = []
    conv_dims = []
    size = input_shape
    c_in = 3
    for (w, b) in params["conv"]:
        c_out = int(w.shape[-1])
        wk, brow, hsel = _conv_row_operands(w, b, size)
        vsel = _vpool_select(size, batch)
        operands += [jnp.asarray(wk), jnp.asarray(brow),
                     jnp.asarray(hsel), jnp.asarray(vsel)]
        conv_dims.append((size, size, c_in, c_out))
        size //= 2
        c_in = c_out
    for (w, b) in params["fc"]:
        operands += [w, jnp.reshape(b, (1, -1))]
    w, b = params["out"]
    operands += [w, jnp.reshape(b, (1, -1))]
    cfg = dict(batch=batch, conv_dims=tuple(conv_dims),
               n_fc=len(params["fc"]), num_classes=int(w.shape[1]))
    return operands, cfg


def _full_block_spec(a):
    nd = a.ndim
    return pl.BlockSpec(a.shape, lambda i, _nd=nd: (0,) * _nd)


def make_forward(cfg):
    conv_dims = cfg["conv_dims"]
    N = cfg["batch"]
    n_fc = cfg["n_fc"]
    num_classes = cfg["num_classes"]
    H0, W0, Cin0, _ = conv_dims[0]
    Hl, Wl, _, Cl = conv_dims[-1]

    kernel = functools.partial(
        _fused_cnn_kernel, batch=N, conv_dims=conv_dims, n_fc=n_fc)

    scratch = [pltpu.VMEM(((H + 2) * N, W * Cin), jnp.float32)
               for (H, W, Cin, _Cout) in conv_dims]
    scratch.append(pltpu.VMEM(((Hl // 2) * N, (Wl // 2) * Cl), jnp.float32))

    @jax.jit
    def forward(operands, x_nchw):
        # NCHW -> h-major row-flat NHWC (one tiny boundary transpose).
        x_rows = jnp.transpose(x_nchw, (2, 0, 3, 1)).reshape(H0 * N, W0 * Cin0)
        ins = [x_rows] + list(operands)
        return pl.pallas_call(
            kernel,
            out_shape=jax.ShapeDtypeStruct((N, num_classes), jnp.float32),
            grid=(1,),
            in_specs=[_full_block_spec(a) for a in ins],
            out_specs=pl.BlockSpec((N, num_classes), lambda i: (0, 0)),
            scratch_shapes=scratch,
            compiler_params=pltpu.CompilerParams(
                dimension_semantics=("arbitrary",)),
        )(*ins)

    return forward


# ----------------------------------------------------------------------------
# Deterministic synthetic parameters + pure-JAX reference (for validation)
# ----------------------------------------------------------------------------
def init_params(key, num_classes, input_shape, cnn_channels, fc_channels):
    chans = [3] + list(cnn_channels)
    num_cnn_layers = len(chans)
    params = {"conv": [], "fc": []}
    for c_in, c_out in zip(chans[:-1], chans[1:]):
        key, kw, kb = jax.random.split(key, 3)
        w = jax.random.normal(kw, (3, 3, c_in, c_out), jnp.float32) * (2.0 / (9 * c_in)) ** 0.5
        b = jax.random.normal(kb, (c_out,), jnp.float32) * 0.01
        params["conv"].append((w, b))
    # fc1 rows are generated directly in (h, w, c) NHWC-flatten order; a torch
    # checkpoint (NCHW flatten) would need a one-time offline row permutation.
    fc_in = chans[-1] * (input_shape // 2 ** (num_cnn_layers - 1)) ** 2
    dims = [fc_in] + list(fc_channels)
    for d_in, d_out in zip(dims[:-1], dims[1:]):
        key, kw, kb = jax.random.split(key, 3)
        w = jax.random.normal(kw, (d_in, d_out), jnp.float32) * (2.0 / d_in) ** 0.5
        b = jax.random.normal(kb, (d_out,), jnp.float32) * 0.01
        params["fc"].append((w, b))
    key, kw, kb = jax.random.split(key, 3)
    w = jax.random.normal(kw, (dims[-1], num_classes), jnp.float32) * (1.0 / dims[-1]) ** 0.5
    b = jax.random.normal(kb, (num_classes,), jnp.float32) * 0.01
    params["out"] = (w, b)
    return params


def reference_forward(params, x_nchw):
    hi = lax.Precision.HIGHEST
    x = jnp.transpose(x_nchw, (0, 2, 3, 1))  # NHWC
    for w, b in params["conv"]:
        x = lax.conv_general_dilated(
            x, w, (1, 1), "SAME",
            dimension_numbers=("NHWC", "HWIO", "NHWC"), precision=hi)
        x = jnp.maximum(x + b, 0.0)
        x = lax.reduce_window(x, -jnp.inf, lax.max,
                              (1, 2, 2, 1), (1, 2, 2, 1), "VALID")
    x = x.reshape(x.shape[0], -1)  # (h, w, c) flatten order (matches fc1 layout)
    for w, b in params["fc"]:
        x = jnp.maximum(jnp.dot(x, w, precision=hi) + b, 0.0)
    w, b = params["out"]
    return jnp.dot(x, w, precision=hi) + b


if __name__ == "__main__":
    num_classes = 10
    input_shape = 16              # must be divisible by 2**num_conv_layers
    cnn_channels = [8, 16, 32]    # small config consistent with the module
    fc_channels = [64, 32]
    batch = 2

    key = jax.random.PRNGKey(0)
    kp, kx = jax.random.split(key)
    params = init_params(kp, num_classes, input_shape, cnn_channels, fc_channels)
    operands, cfg = prepare(params, batch, input_shape)
    forward = make_forward(cfg)

    x = jax.random.normal(kx, (batch, 3, input_shape, input_shape), jnp.float32)
    out = jax.block_until_ready(forward(operands, x))

    assert out.shape == (batch, num_classes), out.shape
    assert out.dtype == jnp.float32
    ref = jax.block_until_ready(reference_forward(params, x))
    assert jnp.allclose(out, ref, rtol=2e-2, atol=2e-2), (
        "max abs diff = %r" % float(jnp.max(jnp.abs(out - ref))))
    print("KERNEL_OK")
</pallas_src>

<mosaic_0001>
module attributes {stable_mosaic.version = 11 : i64} {
  func.func @_fused_cnn_kernel(%arg0: i32, %arg1: memref<32x48xf32, #tpu.memory_space<vmem>>, %arg2: memref<3x48x128xf32, #tpu.memory_space<vmem>>, %arg3: memref<1x128xf32, #tpu.memory_space<vmem>>, %arg4: memref<2x128x64xf32, #tpu.memory_space<vmem>>, %arg5: memref<2x16x32xf32, #tpu.memory_space<vmem>>, %arg6: memref<3x64x128xf32, #tpu.memory_space<vmem>>, %arg7: memref<1x128xf32, #tpu.memory_space<vmem>>, %arg8: memref<2x128x64xf32, #tpu.memory_space<vmem>>, %arg9: memref<2x8x16xf32, #tpu.memory_space<vmem>>, %arg10: memref<3x64x128xf32, #tpu.memory_space<vmem>>, %arg11: memref<1x128xf32, #tpu.memory_space<vmem>>, %arg12: memref<2x128x64xf32, #tpu.memory_space<vmem>>, %arg13: memref<2x4x8xf32, #tpu.memory_space<vmem>>, %arg14: memref<128x64xf32, #tpu.memory_space<vmem>>, %arg15: memref<1x64xf32, #tpu.memory_space<vmem>>, %arg16: memref<64x32xf32, #tpu.memory_space<vmem>>, %arg17: memref<1x32xf32, #tpu.memory_space<vmem>>, %arg18: memref<32x10xf32, #tpu.memory_space<vmem>>, %arg19: memref<1x10xf32, #tpu.memory_space<vmem>>, %arg20: memref<2x10xf32, #tpu.memory_space<vmem>>, %arg21: memref<36x48xf32, #tpu.memory_space<vmem>>, %arg22: memref<20x64xf32, #tpu.memory_space<vmem>>, %arg23: memref<12x64xf32, #tpu.memory_space<vmem>>, %arg24: memref<4x64xf32, #tpu.memory_space<vmem>>) attributes {dimension_semantics = [#tpu.dimension_semantics<arbitrary>], iteration_bounds = array<i64: 1>, scalar_prefetch = 0 : i64, scratch_operands = 4 : i64, tpu.core_type = #tpu.core_type<tc>, window_params = [{pipeline_mode = #tpu.pipeline_mode<synchronous>, transform_indices = @transform_0, window_bounds = array<i64: 32, 48>}, {pipeline_mode = #tpu.pipeline_mode<synchronous>, transform_indices = @transform_1, window_bounds = array<i64: 3, 48, 128>}, {pipeline_mode = #tpu.pipeline_mode<synchronous>, transform_indices = @transform_2, window_bounds = array<i64: 1, 128>}, {pipeline_mode = #tpu.pipeline_mode<synchronous>, transform_indices = @transform_3, window_bounds = array<i64: 2, 128, 64>}, {pipeline_mode = #tpu.pipeline_mode<synchronous>, transform_indices = @transform_4, window_bounds = array<i64: 2, 16, 32>}, {pipeline_mode = #tpu.pipeline_mode<synchronous>, transform_indices = @transform_5, window_bounds = array<i64: 3, 64, 128>}, {pipeline_mode = #tpu.pipeline_mode<synchronous>, transform_indices = @transform_6, window_bounds = array<i64: 1, 128>}, {pipeline_mode = #tpu.pipeline_mode<synchronous>, transform_indices = @transform_7, window_bounds = array<i64: 2, 128, 64>}, {pipeline_mode = #tpu.pipeline_mode<synchronous>, transform_indices = @transform_8, window_bounds = array<i64: 2, 8, 16>}, {pipeline_mode = #tpu.pipeline_mode<synchronous>, transform_indices = @transform_9, window_bounds = array<i64: 3, 64, 128>}, {pipeline_mode = #tpu.pipeline_mode<synchronous>, transform_indices = @transform_10, window_bounds = array<i64: 1, 128>}, {pipeline_mode = #tpu.pipeline_mode<synchronous>, transform_indices = @transform_11, window_bounds = array<i64: 2, 128, 64>}, {pipeline_mode = #tpu.pipeline_mode<synchronous>, transform_indices = @transform_12, window_bounds = array<i64: 2, 4, 8>}, {pipeline_mode = #tpu.pipeline_mode<synchronous>, transform_indices = @transform_13, window_bounds = array<i64: 128, 64>}, {pipeline_mode = #tpu.pipeline_mode<synchronous>, transform_indices = @transform_14, window_bounds = array<i64: 1, 64>}, {pipeline_mode = #tpu.pipeline_mode<synchronous>, transform_indices = @transform_15, window_bounds = array<i64: 64, 32>}, {pipeline_mode = #tpu.pipeline_mode<synchronous>, transform_indices = @transform_16, window_bounds = array<i64: 1, 32>}, {pipeline_mode = #tpu.pipeline_mode<synchronous>, transform_indices = @transform_17, window_bounds = array<i64: 32, 10>}, {pipeline_mode = #tpu.pipeline_mode<synchronous>, transform_indices = @transform_18, window_bounds = array<i64: 1, 10>}, {pipeline_mode = #tpu.pipeline_mode<synchronous>, transform_indices = @transform_19, window_bounds = array<i64: 2, 10>}]} {
    %c0 = arith.constant 0 : index
    %c0_0 = arith.constant 0 : index
    %0 = vector.load %arg1[%c0, %c0_0] : memref<32x48xf32, #tpu.memory_space<vmem>>, vector<32x48xf32>
    %cst = arith.constant 0.000000e+00 : f32
    %1 = vector.broadcast %cst : f32 to vector<36x48xf32>
    %c0_1 = arith.constant 0 : index
    %c0_2 = arith.constant 0 : index
    %2 = vector.load %arg21[%c0_1, %c0_2] : memref<36x48xf32, #tpu.memory_space<vmem>>, vector<36x48xf32>
    tpu.vector_store %arg21[%c0_1, %c0_2], %1 {strides = array<i32>} : memref<36x48xf32, #tpu.memory_space<vmem>>, vector<36x48xf32>,
    %c2 = arith.constant 2 : index
    %c0_3 = arith.constant 0 : index
    %3 = vector.load %arg21[%c2, %c0_3] : memref<36x48xf32, #tpu.memory_space<vmem>>, vector<32x48xf32>
    tpu.vector_store %arg21[%c2, %c0_3], %0 {strides = array<i32>} : memref<36x48xf32, #tpu.memory_space<vmem>>, vector<32x48xf32>,
    %cst_4 = arith.constant 0.000000e+00 : f32
    %4 = vector.broadcast %cst_4 : f32 to vector<32x128xf32>
    %c0_5 = arith.constant 0 : index
    %c0_6 = arith.constant 0 : index
    %5 = vector.load %arg21[%c0_5, %c0_6] : memref<36x48xf32, #tpu.memory_space<vmem>>, vector<32x48xf32>
    %c0_7 = arith.constant 0 : index
    %c0_8 = arith.constant 0 : index
    %c0_9 = arith.constant 0 : index
    %6 = vector.load %arg2[%c0_7, %c0_8, %c0_9] : memref<3x48x128xf32, #tpu.memory_space<vmem>>, vector<1x48x128xf32>
    %7 = vector.shape_cast %6 : vector<1x48x128xf32> to vector<48x128xf32>
    %cst_10 = arith.constant dense<0.000000e+00> : vector<32x128xf32>
    %8 = tpu.matmul %5, %7, %cst_10 {dimension_numbers = #tpu.dot_dimension_numbers<[1], [0], [0], [1], [0, 0, 1, 1], [], []>} : vector<32x48xf32>, vector<48x128xf32>, vector<32x128xf32> -> vector<32x128xf32>
    %9 = arith.addf %4, %8 : vector<32x128xf32>
    %c2_11 = arith.constant 2 : index
    %c0_12 = arith.constant 0 : index
    %10 = vector.load %arg21[%c2_11, %c0_12] : memref<36x48xf32, #tpu.memory_space<vmem>>, vector<32x48xf32>
    %c1 = arith.constant 1 : index
    %c0_13 = arith.constant 0 : index
    %c0_14 = arith.constant 0 : index
    %11 = vector.load %arg2[%c1, %c0_13, %c0_14] : memref<3x48x128xf32, #tpu.memory_space<vmem>>, vector<1x48x128xf32>
    %12 = vector.shape_cast %11 : vector<1x48x128xf32> to vector<48x128xf32>
    %cst_15 = arith.constant dense<0.000000e+00> : vector<32x128xf32>
    %13 = tpu.matmul %10, %12, %cst_15 {dimension_numbers = #tpu.dot_dimension_numbers<[1], [0], [0], [1], [0, 0, 1, 1], [], []>} : vector<32x48xf32>, vector<48x128xf32>, vector<32x128xf32> -> vector<32x128xf32>
    %14 = arith.addf %9, %13 : vector<32x128xf32>
    %c4 = arith.constant 4 : index
    %c0_16 = arith.constant 0 : index
    %15 = vector.load %arg21[%c4, %c0_16] : memref<36x48xf32, #tpu.memory_space<vmem>>, vector<32x48xf32>
    %c2_17 = arith.constant 2 : index
    %c0_18 = arith.constant 0 : index
    %c0_19 = arith.constant 0 : index
    %16 = vector.load %arg2[%c2_17, %c0_18, %c0_19] : memref<3x48x128xf32, #tpu.memory_space<vmem>>, vector<1x48x128xf32>
    %17 = vector.shape_cast %16 : vector<1x48x128xf32> to vector<48x128xf32>
    %cst_20 = arith.constant dense<0.000000e+00> : vector<32x128xf32>
    %18 = tpu.matmul %15, %17, %cst_20 {dimension_numbers = #tpu.dot_dimension_numbers<[1], [0], [0], [1], [0, 0, 1, 1], [], []>} : vector<32x48xf32>, vector<48x128xf32>, vector<32x128xf32> -> vector<32x128xf32>
    %19 = arith.addf %14, %18 : vector<32x128xf32>
    %c0_21 = arith.constant 0 : index
    %c0_22 = arith.constant 0 : index
    %20 = vector.load %arg3[%c0_21, %c0_22] : memref<1x128xf32, #tpu.memory_space<vmem>>, vector<1x128xf32>
    %21 = vector.broadcast %20 : vector<1x128xf32> to vector<32x128xf32>
    %22 = arith.addf %19, %21 : vector<32x128xf32>
    %cst_23 = arith.constant 0.000000e+00 : f32
    %23 = vector.broadcast %cst_23 : f32 to vector<32x128xf32>
    %24 = arith.maximumf %22, %23 : vector<32x128xf32>
    %c0_24 = arith.constant 0 : index
    %c0_25 = arith.constant 0 : index
    %c0_26 = arith.constant 0 : index
    %25 = vector.load %arg4[%c0_24, %c0_25, %c0_26] : memref<2x128x64xf32, #tpu.memory_space<vmem>>, vector<1x128x64xf32>
    %26 = vector.shape_cast %25 : vector<1x128x64xf32> to vector<128x64xf32>
    %cst_27 = arith.constant dense<0.000000e+00> : vector<32x64xf32>
    %27 = tpu.matmul %24, %26, %cst_27 {dimension_numbers = #tpu.dot_dimension_numbers<[1], [0], [0], [1], [0, 0, 1, 1], [], []>} : vector<32x128xf32>, vector<128x64xf32>, vector<32x64xf32> -> vector<32x64xf32>
    %c1_28 = arith.constant 1 : index
    %c0_29 = arith.constant 0 : index
    %c0_30 = arith.constant 0 : index
    %28 = vector.load %arg4[%c1_28, %c0_29, %c0_30] : memref<2x128x64xf32, #tpu.memory_space<vmem>>, vector<1x128x64xf32>
    %29 = vector.shape_cast %28 : vector<1x128x64xf32> to vector<128x64xf32>
    %cst_31 = arith.constant dense<0.000000e+00> : vector<32x64xf32>
    %30 = tpu.matmul %24, %29, %cst_31 {dimension_numbers = #tpu.dot_dimension_numbers<[1], [0], [0], [1], [0, 0, 1, 1], [], []>} : vector<32x128xf32>, vector<128x64xf32>, vector<32x64xf32> -> vector<32x64xf32>
    %31 = arith.maximumf %27, %30 : vector<32x64xf32>
    %c0_32 = arith.constant 0 : index
    %c0_33 = arith.constant 0 : index
    %c0_34 = arith.constant 0 : index
    %32 = vector.load %arg5[%c0_32, %c0_33, %c0_34] : memref<2x16x32xf32, #tpu.memory_space<vmem>>, vector<1x16x32xf32>
    %33 = vector.shape_cast %32 : vector<1x16x32xf32> to vector<16x32xf32>
    %cst_35 = arith.constant dense<0.000000e+00> : vector<16x64xf32>
    %34 = tpu.matmul %33, %31, %cst_35 {dimension_numbers = #tpu.dot_dimension_numbers<[1], [0], [0], [1], [0, 0, 1, 1], [], []>} : vector<16x32xf32>, vector<32x64xf32>, vector<16x64xf32> -> vector<16x64xf32>
    %c1_36 = arith.constant 1 : index
    %c0_37 = arith.constant 0 : index
    %c0_38 = arith.constant 0 : index
    %35 = vector.load %arg5[%c1_36, %c0_37, %c0_38] : memref<2x16x32xf32, #tpu.memory_space<vmem>>, vector<1x16x32xf32>
    %36 = vector.shape_cast %35 : vector<1x16x32xf32> to vector<16x32xf32>
    %cst_39 = arith.constant dense<0.000000e+00> : vector<16x64xf32>
    %37 = tpu.matmul %36, %31, %cst_39 {dimension_numbers = #tpu.dot_dimension_numbers<[1], [0], [0], [1], [0, 0, 1, 1], [], []>} : vector<16x32xf32>, vector<32x64xf32>, vector<16x64xf32> -> vector<16x64xf32>
    %38 = arith.maximumf %34, %37 : vector<16x64xf32>
    %cst_40 = arith.constant 0.000000e+00 : f32
    %39 = vector.broadcast %cst_40 : f32 to vector<20x64xf32>
    %c0_41 = arith.constant 0 : index
    %c0_42 = arith.constant 0 : index
    %40 = vector.load %arg22[%c0_41, %c0_42] : memref<20x64xf32, #tpu.memory_space<vmem>>, vector<20x64xf32>
    tpu.vector_store %arg22[%c0_41, %c0_42], %39 {strides = array<i32>} : memref<20x64xf32, #tpu.memory_space<vmem>>, vector<20x64xf32>,
    %c2_43 = arith.constant 2 : index
    %c0_44 = arith.constant 0 : index
    %41 = vector.load %arg22[%c2_43, %c0_44] : memref<20x64xf32, #tpu.memory_space<vmem>>, vector<16x64xf32>
    tpu.vector_store %arg22[%c2_43, %c0_44], %38 {strides = array<i32>} : memref<20x64xf32, #tpu.memory_space<vmem>>, vector<16x64xf32>,
    %cst_45 = arith.constant 0.000000e+00 : f32
    %42 = vector.broadcast %cst_45 : f32 to vector<16x128xf32>
    %c0_46 = arith.constant 0 : index
    %c0_47 = arith.constant 0 : index
    %43 = vector.load %arg22[%c0_46, %c0_47] : memref<20x64xf32, #tpu.memory_space<vmem>>, vector<16x64xf32>
    %c0_48 = arith.constant 0 : index
    %c0_49 = arith.constant 0 : index
    %c0_50 = arith.constant 0 : index
    %44 = vector.load %arg6[%c0_48, %c0_49, %c0_50] : memref<3x64x128xf32, #tpu.memory_space<vmem>>, vector<1x64x128xf32>
    %45 = vector.shape_cast %44 : vector<1x64x128xf32> to vector<64x128xf32>
    %cst_51 = arith.constant dense<0.000000e+00> : vector<16x128xf32>
    %46 = tpu.matmul %43, %45, %cst_51 {dimension_numbers = #tpu.dot_dimension_numbers<[1], [0], [0], [1], [0, 0, 1, 1], [], []>} : vector<16x64xf32>, vector<64x128xf32>, vector<16x128xf32> -> vector<16x128xf32>
    %47 = arith.addf %42, %46 : vector<16x128xf32>
    %c2_52 = arith.constant 2 : index
    %c0_53 = arith.constant 0 : index
    %48 = vector.load %arg22[%c2_52, %c0_53] : memref<20x64xf32, #tpu.memory_space<vmem>>, vector<16x64xf32>
    %c1_54 = arith.constant 1 : index
    %c0_55 = arith.constant 0 : index
    %c0_56 = arith.constant 0 : index
    %49 = vector.load %arg6[%c1_54, %c0_55, %c0_56] : memref<3x64x128xf32, #tpu.memory_space<vmem>>, vector<1x64x128xf32>
    %50 = vector.shape_cast %49 : vector<1x64x128xf32> to vector<64x128xf32>
    %cst_57 = arith.constant dense<0.000000e+00> : vector<16x128xf32>
    %51 = tpu.matmul %48, %50, %cst_57 {dimension_numbers = #tpu.dot_dimension_numbers<[1], [0], [0], [1], [0, 0, 1, 1], [], []>} : vector<16x64xf32>, vector<64x128xf32>, vector<16x128xf32> -> vector<16x128xf32>
    %52 = arith.addf %47, %51 : vector<16x128xf32>
    %c4_58 = arith.constant 4 : index
    %c0_59 = arith.constant 0 : index
    %53 = vector.load %arg22[%c4_58, %c0_59] : memref<20x64xf32, #tpu.memory_space<vmem>>, vector<16x64xf32>
    %c2_60 = arith.constant 2 : index
    %c0_61 = arith.constant 0 : index
    %c0_62 = arith.constant 0 : index
    %54 = vector.load %arg6[%c2_60, %c0_61, %c0_62] : memref<3x64x128xf32, #tpu.memory_space<vmem>>, vector<1x64x128xf32>
    %55 = vector.shape_cast %54 : vector<1x64x128xf32> to vector<64x128xf32>
    %cst_63 = arith.constant dense<0.000000e+00> : vector<16x128xf32>
    %56 = tpu.matmul %53, %55, %cst_63 {dimension_numbers = #tpu.dot_dimension_numbers<[1], [0], [0], [1], [0, 0, 1, 1], [], []>} : vector<16x64xf32>, vector<64x128xf32>, vector<16x128xf32> -> vector<16x128xf32>
    %57 = arith.addf %52, %56 : vector<16x128xf32>
    %c0_64 = arith.constant 0 : index
    %c0_65 = arith.constant 0 : index
    %58 = vector.load %arg7[%c0_64, %c0_65] : memref<1x128xf32, #tpu.memory_space<vmem>>, vector<1x128xf32>
    %59 = vector.broadcast %58 : vector<1x128xf32> to vector<16x128xf32>
    %60 = arith.addf %57, %59 : vector<16x128xf32>
    %cst_66 = arith.constant 0.000000e+00 : f32
    %61 = vector.broadcast %cst_66 : f32 to vector<16x128xf32>
    %62 = arith.maximumf %60, %61 : vector<16x128xf32>
    %c0_67 = arith.constant 0 : index
    %c0_68 = arith.constant 0 : index
    %c0_69 = arith.constant 0 : index
    %63 = vector.load %arg8[%c0_67, %c0_68, %c0_69] : memref<2x128x64xf32, #tpu.memory_space<vmem>>, vector<1x128x64xf32>
    %64 = vector.shape_cast %63 : vector<1x128x64xf32> to vector<128x64xf32>
    %cst_70 = arith.constant dense<0.000000e+00> : vector<16x64xf32>
    %65 = tpu.matmul %62, %64, %cst_70 {dimension_numbers = #tpu.dot_dimension_numbers<[1], [0], [0], [1], [0, 0, 1, 1], [], []>} : vector<16x128xf32>, vector<128x64xf32>, vector<16x64xf32> -> vector<16x64xf32>
    %c1_71 = arith.constant 1 : index
    %c0_72 = arith.constant 0 : index
    %c0_73 = arith.constant 0 : index
    %66 = vector.load %arg8[%c1_71, %c0_72, %c0_73] : memref<2x128x64xf32, #tpu.memory_space<vmem>>, vector<1x128x64xf32>
    %67 = vector.shape_cast %66 : vector<1x128x64xf32> to vector<128x64xf32>
    %cst_74 = arith.constant dense<0.000000e+00> : vector<16x64xf32>
    %68 = tpu.matmul %62, %67, %cst_74 {dimension_numbers = #tpu.dot_dimension_numbers<[1], [0], [0], [1], [0, 0, 1, 1], [], []>} : vector<16x128xf32>, vector<128x64xf32>, vector<16x64xf32> -> vector<16x64xf32>
    %69 = arith.maximumf %65, %68 : vector<16x64xf32>
    %c0_75 = arith.constant 0 : index
    %c0_76 = arith.constant 0 : index
    %c0_77 = arith.constant 0 : index
    %70 = vector.load %arg9[%c0_75, %c0_76, %c0_77] : memref<2x8x16xf32, #tpu.memory_space<vmem>>, vector<1x8x16xf32>
    %71 = vector.shape_cast %70 : vector<1x8x16xf32> to vector<8x16xf32>
    %cst_78 = arith.constant dense<0.000000e+00> : vector<8x64xf32>
    %72 = tpu.matmul %71, %69, %cst_78 {dimension_numbers = #tpu.dot_dimension_numbers<[1], [0], [0], [1], [0, 0, 1, 1], [], []>} : vector<8x16xf32>, vector<16x64xf32>, vector<8x64xf32> -> vector<8x64xf32>
    %c1_79 = arith.constant 1 : index
    %c0_80 = arith.constant 0 : index
    %c0_81 = arith.constant 0 : index
    %73 = vector.load %arg9[%c1_79, %c0_80, %c0_81] : memref<2x8x16xf32, #tpu.memory_space<vmem>>, vector<1x8x16xf32>
    %74 = vector.shape_cast %73 : vector<1x8x16xf32> to vector<8x16xf32>
    %cst_82 = arith.constant dense<0.000000e+00> : vector<8x64xf32>
    %75 = tpu.matmul %74, %69, %cst_82 {dimension_numbers = #tpu.dot_dimension_numbers<[1], [0], [0], [1], [0, 0, 1, 1], [], []>} : vector<8x16xf32>, vector<16x64xf32>, vector<8x64xf32> -> vector<8x64xf32>
    %76 = arith.maximumf %72, %75 : vector<8x64xf32>
    %cst_83 = arith.constant 0.000000e+00 : f32
    %77 = vector.broadcast %cst_83 : f32 to vector<12x64xf32>
    %c0_84 = arith.constant 0 : index
    %c0_85 = arith.constant 0 : index
    %78 = vector.load %arg23[%c0_84, %c0_85] : memref<12x64xf32, #tpu.memory_space<vmem>>, vector<12x64xf32>
    tpu.vector_store %arg23[%c0_84, %c0_85], %77 {strides = array<i32>} : memref<12x64xf32, #tpu.memory_space<vmem>>, vector<12x64xf32>,
    %c2_86 = arith.constant 2 : index
    %c0_87 = arith.constant 0 : index
    %79 = vector.load %arg23[%c2_86, %c0_87] : memref<12x64xf32, #tpu.memory_space<vmem>>, vector<8x64xf32>
    tpu.vector_store %arg23[%c2_86, %c0_87], %76 {strides = array<i32>} : memref<12x64xf32, #tpu.memory_space<vmem>>, vector<8x64xf32>,
    %cst_88 = arith.constant 0.000000e+00 : f32
    %80 = vector.broadcast %cst_88 : f32 to vector<8x128xf32>
    %c0_89 = arith.constant 0 : index
    %c0_90 = arith.constant 0 : index
    %81 = vector.load %arg23[%c0_89, %c0_90] : memref<12x64xf32, #tpu.memory_space<vmem>>, vector<8x64xf32>
    %c0_91 = arith.constant 0 : index
    %c0_92 = arith.constant 0 : index
    %c0_93 = arith.constant 0 : index
    %82 = vector.load %arg10[%c0_91, %c0_92, %c0_93] : memref<3x64x128xf32, #tpu.memory_space<vmem>>, vector<1x64x128xf32>
    %83 = vector.shape_cast %82 : vector<1x64x128xf32> to vector<64x128xf32>
    %cst_94 = arith.constant dense<0.000000e+00> : vector<8x128xf32>
    %84 = tpu.matmul %81, %83, %cst_94 {dimension_numbers = #tpu.dot_dimension_numbers<[1], [0], [0], [1], [0, 0, 1, 1], [], []>} : vector<8x64xf32>, vector<64x128xf32>, vector<8x128xf32> -> vector<8x128xf32>
    %85 = arith.addf %80, %84 : vector<8x128xf32>
    %c2_95 = arith.constant 2 : index
    %c0_96 = arith.constant 0 : index
    %86 = vector.load %arg23[%c2_95, %c0_96] : memref<12x64xf32, #tpu.memory_space<vmem>>, vector<8x64xf32>
    %c1_97 = arith.constant 1 : index
    %c0_98 = arith.constant 0 : index
    %c0_99 = arith.constant 0 : index
    %87 = vector.load %arg10[%c1_97, %c0_98, %c0_99] : memref<3x64x128xf32, #tpu.memory_space<vmem>>, vector<1x64x128xf32>
    %88 = vector.shape_cast %87 : vector<1x64x128xf32> to vector<64x128xf32>
    %cst_100 = arith.constant dense<0.000000e+00> : vector<8x128xf32>
    %89 = tpu.matmul %86, %88, %cst_100 {dimension_numbers = #tpu.dot_dimension_numbers<[1], [0], [0], [1], [0, 0, 1, 1], [], []>} : vector<8x64xf32>, vector<64x128xf32>, vector<8x128xf32> -> vector<8x128xf32>
    %90 = arith.addf %85, %89 : vector<8x128xf32>
    %c4_101 = arith.constant 4 : index
    %c0_102 = arith.constant 0 : index
    %91 = vector.load %arg23[%c4_101, %c0_102] : memref<12x64xf32, #tpu.memory_space<vmem>>, vector<8x64xf32>
    %c2_103 = arith.constant 2 : index
    %c0_104 = arith.constant 0 : index
    %c0_105 = arith.constant 0 : index
    %92 = vector.load %arg10[%c2_103, %c0_104, %c0_105] : memref<3x64x128xf32, #tpu.memory_space<vmem>>, vector<1x64x128xf32>
    %93 = vector.shape_cast %92 : vector<1x64x128xf32> to vector<64x128xf32>
    %cst_106 = arith.constant dense<0.000000e+00> : vector<8x128xf32>
    %94 = tpu.matmul %91, %93, %cst_106 {dimension_numbers = #tpu.dot_dimension_numbers<[1], [0], [0], [1], [0, 0, 1, 1], [], []>} : vector<8x64xf32>, vector<64x128xf32>, vector<8x128xf32> -> vector<8x128xf32>
    %95 = arith.addf %90, %94 : vector<8x128xf32>
    %c0_107 = arith.constant 0 : index
    %c0_108 = arith.constant 0 : index
    %96 = vector.load %arg11[%c0_107, %c0_108] : memref<1x128xf32, #tpu.memory_space<vmem>>, vector<1x128xf32>
    %97 = vector.broadcast %96 : vector<1x128xf32> to vector<8x128xf32>
    %98 = arith.addf %95, %97 : vector<8x128xf32>
    %cst_109 = arith.constant 0.000000e+00 : f32
    %99 = vector.broadcast %cst_109 : f32 to vector<8x128xf32>
    %100 = arith.maximumf %98, %99 : vector<8x128xf32>
    %c0_110 = arith.constant 0 : index
    %c0_111 = arith.constant 0 : index
    %c0_112 = arith.constant 0 : index
    %101 = vector.load %arg12[%c0_110, %c0_111, %c0_112] : memref<2x128x64xf32, #tpu.memory_space<vmem>>, vector<1x128x64xf32>
    %102 = vector.shape_cast %101 : vector<1x128x64xf32> to vector<128x64xf32>
    %cst_113 = arith.constant dense<0.000000e+00> : vector<8x64xf32>
    %103 = tpu.matmul %100, %102, %cst_113 {dimension_numbers = #tpu.dot_dimension_numbers<[1], [0], [0], [1], [0, 0, 1, 1], [], []>} : vector<8x128xf32>, vector<128x64xf32>, vector<8x64xf32> -> vector<8x64xf32>
    %c1_114 = arith.constant 1 : index
    %c0_115 = arith.constant 0 : index
    %c0_116 = arith.constant 0 : index
    %104 = vector.load %arg12[%c1_114, %c0_115, %c0_116] : memref<2x128x64xf32, #tpu.memory_space<vmem>>, vector<1x128x64xf32>
    %105 = vector.shape_cast %104 : vector<1x128x64xf32> to vector<128x64xf32>
    %cst_117 = arith.constant dense<0.000000e+00> : vector<8x64xf32>
    %106 = tpu.matmul %100, %105, %cst_117 {dimension_numbers = #tpu.dot_dimension_numbers<[1], [0], [0], [1], [0, 0, 1, 1], [], []>} : vector<8x128xf32>, vector<128x64xf32>, vector<8x64xf32> -> vector<8x64xf32>
    %107 = arith.maximumf %103, %106 : vector<8x64xf32>
    %c0_118 = arith.constant 0 : index
    %c0_119 = arith.constant 0 : index
    %c0_120 = arith.constant 0 : index
    %108 = vector.load %arg13[%c0_118, %c0_119, %c0_120] : memref<2x4x8xf32, #tpu.memory_space<vmem>>, vector<1x4x8xf32>
    %109 = vector.shape_cast %108 : vector<1x4x8xf32> to vector<4x8xf32>
    %cst_121 = arith.constant dense<0.000000e+00> : vector<4x64xf32>
    %110 = tpu.matmul %109, %107, %cst_121 {dimension_numbers = #tpu.dot_dimension_numbers<[1], [0], [0], [1], [0, 0, 1, 1], [], []>} : vector<4x8xf32>, vector<8x64xf32>, vector<4x64xf32> -> vector<4x64xf32>
    %c1_122 = arith.constant 1 : index
    %c0_123 = arith.constant 0 : index
    %c0_124 = arith.constant 0 : index
    %111 = vector.load %arg13[%c1_122, %c0_123, %c0_124] : memref<2x4x8xf32, #tpu.memory_space<vmem>>, vector<1x4x8xf32>
    %112 = vector.shape_cast %111 : vector<1x4x8xf32> to vector<4x8xf32>
    %cst_125 = arith.constant dense<0.000000e+00> : vector<4x64xf32>
    %113 = tpu.matmul %112, %107, %cst_125 {dimension_numbers = #tpu.dot_dimension_numbers<[1], [0], [0], [1], [0, 0, 1, 1], [], []>} : vector<4x8xf32>, vector<8x64xf32>, vector<4x64xf32> -> vector<4x64xf32>
    %114 = arith.maximumf %110, %113 : vector<4x64xf32>
    %c0_126 = arith.constant 0 : index
    %c0_127 = arith.constant 0 : index
    %115 = vector.load %arg24[%c0_126, %c0_127] : memref<4x64xf32, #tpu.memory_space<vmem>>, vector<4x64xf32>
    tpu.vector_store %arg24[%c0_126, %c0_127], %114 {strides = array<i32>} : memref<4x64xf32, #tpu.memory_space<vmem>>, vector<4x64xf32>,
    %cst_128 = arith.constant 0.000000e+00 : f32
    %116 = vector.broadcast %cst_128 : f32 to vector<2x64xf32>
    %c0_129 = arith.constant 0 : index
    %c0_130 = arith.constant 0 : index
    %117 = vector.load %arg24[%c0_129, %c0_130] : memref<4x64xf32, #tpu.memory_space<vmem>>, vector<2x64xf32>
    %c0_131 = arith.constant 0 : index
    %c0_132 = arith.constant 0 : index
    %118 = vector.load %arg14[%c0_131, %c0_132] : memref<128x64xf32, #tpu.memory_space<vmem>>, vector<64x64xf32>
    %cst_133 = arith.constant dense<0.000000e+00> : vector<2x64xf32>
    %119 = tpu.matmul %117, %118, %cst_133 {dimension_numbers = #tpu.dot_dimension_numbers<[1], [0], [0], [1], [0, 0, 1, 1], [], []>} : vector<2x64xf32>, vector<64x64xf32>, vector<2x64xf32> -> vector<2x64xf32>
    %120 = arith.addf %116, %119 : vector<2x64xf32>
    %c2_134 = arith.constant 2 : index
    %c0_135 = arith.constant 0 : index
    %121 = vector.load %arg24[%c2_134, %c0_135] : memref<4x64xf32, #tpu.memory_space<vmem>>, vector<2x64xf32>
    %c64 = arith.constant 64 : index
    %c0_136 = arith.constant 0 : index
    %122 = vector.load %arg14[%c64, %c0_136] : memref<128x64xf32, #tpu.memory_space<vmem>>, vector<64x64xf32>
    %cst_137 = arith.constant dense<0.000000e+00> : vector<2x64xf32>
    %123 = tpu.matmul %121, %122, %cst_137 {dimension_numbers = #tpu.dot_dimension_numbers<[1], [0], [0], [1], [0, 0, 1, 1], [], []>} : vector<2x64xf32>, vector<64x64xf32>, vector<2x64xf32> -> vector<2x64xf32>
    %124 = arith.addf %120, %123 : vector<2x64xf32>
    %c0_138 = arith.constant 0 : index
    %c0_139 = arith.constant 0 : index
    %125 = vector.load %arg15[%c0_138, %c0_139] : memref<1x64xf32, #tpu.memory_space<vmem>>, vector<1x64xf32>
    %126 = vector.broadcast %125 : vector<1x64xf32> to vector<2x64xf32>
    %127 = arith.addf %124, %126 : vector<2x64xf32>
    %cst_140 = arith.constant 0.000000e+00 : f32
    %128 = vector.broadcast %cst_140 : f32 to vector<2x64xf32>
    %129 = arith.maximumf %127, %128 : vector<2x64xf32>
    %c0_141 = arith.constant 0 : index
    %c0_142 = arith.constant 0 : index
    %130 = vector.load %arg16[%c0_141, %c0_142] : memref<64x32xf32, #tpu.memory_space<vmem>>, vector<64x32xf32>
    %cst_143 = arith.constant dense<0.000000e+00> : vector<2x32xf32>
    %131 = tpu.matmul %129, %130, %cst_143 {dimension_numbers = #tpu.dot_dimension_numbers<[1], [0], [0], [1], [0, 0, 1, 1], [], []>} : vector<2x64xf32>, vector<64x32xf32>, vector<2x32xf32> -> vector<2x32xf32>
    %c0_144 = arith.constant 0 : index
    %c0_145 = arith.constant 0 : index
    %132 = vector.load %arg17[%c0_144, %c0_145] : memref<1x32xf32, #tpu.memory_space<vmem>>, vector<1x32xf32>
    %133 = vector.broadcast %132 : vector<1x32xf32> to vector<2x32xf32>
    %134 = arith.addf %131, %133 : vector<2x32xf32>
    %cst_146 = arith.constant 0.000000e+00 : f32
    %135 = vector.broadcast %cst_146 : f32 to vector<2x32xf32>
    %136 = arith.maximumf %134, %135 : vector<2x32xf32>
    %c0_147 = arith.constant 0 : index
    %c0_148 = arith.constant 0 : index
    %137 = vector.load %arg18[%c0_147, %c0_148] : memref<32x10xf32, #tpu.memory_space<vmem>>, vector<32x10xf32>
    %cst_149 = arith.constant dense<0.000000e+00> : vector<2x10xf32>
    %138 = tpu.matmul %136, %137, %cst_149 {dimension_numbers = #tpu.dot_dimension_numbers<[1], [0], [0], [1], [0, 0, 1, 1], [], []>} : vector<2x32xf32>, vector<32x10xf32>, vector<2x10xf32> -> vector<2x10xf32>
    %c0_150 = arith.constant 0 : index
    %c0_151 = arith.constant 0 : index
    %139 = vector.load %arg19[%c0_150, %c0_151] : memref<1x10xf32, #tpu.memory_space<vmem>>, vector<1x10xf32>
    %140 = vector.broadcast %139 : vector<1x10xf32> to vector<2x10xf32>
    %141 = arith.addf %138, %140 : vector<2x10xf32>
    %c0_152 = arith.constant 0 : index
    %c0_153 = arith.constant 0 : index
    %142 = vector.load %arg20[%c0_152, %c0_153] : memref<2x10xf32, #tpu.memory_space<vmem>>, vector<2x10xf32>
    tpu.vector_store %arg20[%c0_152, %c0_153], %141 {strides = array<i32>} : memref<2x10xf32, #tpu.memory_space<vmem>>, vector<2x10xf32>,
    return
  }
  func.func @transform_0(%arg0: i32) -> (i32, i32) {
    %c0_i32 = arith.constant 0 : i32
    %c0_i32_0 = arith.constant 0 : i32
    %c0_i32_1 = arith.constant 0 : i32
    return %c0_i32, %c0_i32_0 : i32, i32
  }
  func.func @transform_1(%arg0: i32) -> (i32, i32, i32) {
    %c0_i32 = arith.constant 0 : i32
    %c0_i32_0 = arith.constant 0 : i32
    %c0_i32_1 = arith.constant 0 : i32
    %c0_i32_2 = arith.constant 0 : i32
    return %c0_i32, %c0_i32_0, %c0_i32_1 : i32, i32, i32
  }
  func.func @transform_2(%arg0: i32) -> (i32, i32) {
    %c0_i32 = arith.constant 0 : i32
    %c0_i32_0 = arith.constant 0 : i32
    %c0_i32_1 = arith.constant 0 : i32
    return %c0_i32, %c0_i32_0 : i32, i32
  }
  func.func @transform_3(%arg0: i32) -> (i32, i32, i32) {
    %c0_i32 = arith.constant 0 : i32
    %c0_i32_0 = arith.constant 0 : i32
    %c0_i32_1 = arith.constant 0 : i32
    %c0_i32_2 = arith.constant 0 : i32
    return %c0_i32, %c0_i32_0, %c0_i32_1 : i32, i32, i32
  }
  func.func @transform_4(%arg0: i32) -> (i32, i32, i32) {
    %c0_i32 = arith.constant 0 : i32
    %c0_i32_0 = arith.constant 0 : i32
    %c0_i32_1 = arith.constant 0 : i32
    %c0_i32_2 = arith.constant 0 : i32
    return %c0_i32, %c0_i32_0, %c0_i32_1 : i32, i32, i32
  }
  func.func @transform_5(%arg0: i32) -> (i32, i32, i32) {
    %c0_i32 = arith.constant 0 : i32
    %c0_i32_0 = arith.constant 0 : i32
    %c0_i32_1 = arith.constant 0 : i32
    %c0_i32_2 = arith.constant 0 : i32
    return %c0_i32, %c0_i32_0, %c0_i32_1 : i32, i32, i32
  }
  func.func @transform_6(%arg0: i32) -> (i32, i32) {
    %c0_i32 = arith.constant 0 : i32
    %c0_i32_0 = arith.constant 0 : i32
    %c0_i32_1 = arith.constant 0 : i32
    return %c0_i32, %c0_i32_0 : i32, i32
  }
  func.func @transform_7(%arg0: i32) -> (i32, i32, i32) {
    %c0_i32 = arith.constant 0 : i32
    %c0_i32_0 = arith.constant 0 : i32
    %c0_i32_1 = arith.constant 0 : i32
    %c0_i32_2 = arith.constant 0 : i32
    return %c0_i32, %c0_i32_0, %c0_i32_1 : i32, i32, i32
  }
  func.func @transform_8(%arg0: i32) -> (i32, i32, i32) {
    %c0_i32 = arith.constant 0 : i32
    %c0_i32_0 = arith.constant 0 : i32
    %c0_i32_1 = arith.constant 0 : i32
    %c0_i32_2 = arith.constant 0 : i32
    return %c0_i32, %c0_i32_0, %c0_i32_1 : i32, i32, i32
  }
  func.func @transform_9(%arg0: i32) -> (i32, i32, i32) {
    %c0_i32 = arith.constant 0 : i32
    %c0_i32_0 = arith.constant 0 : i32
    %c0_i32_1 = arith.constant 0 : i32
    %c0_i32_2 = arith.constant 0 : i32
    return %c0_i32, %c0_i32_0, %c0_i32_1 : i32, i32, i32
  }
  func.func @transform_10(%arg0: i32) -> (i32, i32) {
    %c0_i32 = arith.constant 0 : i32
    %c0_i32_0 = arith.constant 0 : i32
    %c0_i32_1 = arith.constant 0 : i32
    return %c0_i32, %c0_i32_0 : i32, i32
  }
  func.func @transform_11(%arg0: i32) -> (i32, i32, i32) {
    %c0_i32 = arith.constant 0 : i32
    %c0_i32_0 = arith.constant 0 : i32
    %c0_i32_1 = arith.constant 0 : i32
    %c0_i32_2 = arith.constant 0 : i32
    return %c0_i32, %c0_i32_0, %c0_i32_1 : i32, i32, i32
  }
  func.func @transform_12(%arg0: i32) -> (i32, i32, i32) {
    %c0_i32 = arith.constant 0 : i32
    %c0_i32_0 = arith.constant 0 : i32
    %c0_i32_1 = arith.constant 0 : i32
    %c0_i32_2 = arith.constant 0 : i32
    return %c0_i32, %c0_i32_0, %c0_i32_1 : i32, i32, i32
  }
  func.func @transform_13(%arg0: i32) -> (i32, i32) {
    %c0_i32 = arith.constant 0 : i32
    %c0_i32_0 = arith.constant 0 : i32
    %c0_i32_1 = arith.constant 0 : i32
    return %c0_i32, %c0_i32_0 : i32, i32
  }
  func.func @transform_14(%arg0: i32) -> (i32, i32) {
    %c0_i32 = arith.constant 0 : i32
    %c0_i32_0 = arith.constant 0 : i32
    %c0_i32_1 = arith.constant 0 : i32
    return %c0_i32, %c0_i32_0 : i32, i32
  }
  func.func @transform_15(%arg0: i32) -> (i32, i32) {
    %c0_i32 = arith.constant 0 : i32
    %c0_i32_0 = arith.constant 0 : i32
    %c0_i32_1 = arith.constant 0 : i32
    return %c0_i32, %c0_i32_0 : i32, i32
  }
  func.func @transform_16(%arg0: i32) -> (i32, i32) {
    %c0_i32 = arith.constant 0 : i32
    %c0_i32_0 = arith.constant 0 : i32
    %c0_i32_1 = arith.constant 0 : i32
    return %c0_i32, %c0_i32_0 : i32, i32
  }
  func.func @transform_17(%arg0: i32) -> (i32, i32) {
    %c0_i32 = arith.constant 0 : i32
    %c0_i32_0 = arith.constant 0 : i32
    %c0_i32_1 = arith.constant 0 : i32
    return %c0_i32, %c0_i32_0 : i32, i32
  }
  func.func @transform_18(%arg0: i32) -> (i32, i32) {
    %c0_i32 = arith.constant 0 : i32
    %c0_i32_0 = arith.constant 0 : i32
    %c0_i32_1 = arith.constant 0 : i32
    return %c0_i32, %c0_i32_0 : i32, i32
  }
  func.func @transform_19(%arg0: i32) -> (i32, i32) {
    %c0_i32 = arith.constant 0 : i32
    %c0_i32_0 = arith.constant 0 : i32
    %c0_i32_1 = arith.constant 0 : i32
    return %c0_i32, %c0_i32_0 : i32, i32
  }
}

</mosaic_0001>

<bundles_post_ra>
// kernel: forward.1
= control target key start
LH: loop header
LB: loop body
LE: loop exit
PB: predicated region body
PF: predicated region fallthrough
CT: control target
= control target key end

     0   :  { %s2015_s0 = inlined_call_operand.vmem [shape: f32[32,48], index: 0, kind: input, shape index: {}]   ;;  %s2016_s1 = inlined_call_operand.vmem [shape: f32[3,48,128], index: 1, kind: input, shape index: {}]   ;;  %s2017_s2 = inlined_call_operand.vmem [shape: f32[1,128], index: 2, kind: input, shape index: {}]   ;;  %s2018_s3 = inlined_call_operand.vmem [shape: f32[2,128,64], index: 3, kind: input, shape index: {}]   ;;  %s2019_s4 = inlined_call_operand.vmem [shape: f32[2,16,32], index: 4, kind: input, shape index: {}]   ;;  %s2020_s5 = inlined_call_operand.vmem [shape: f32[3,64,128], index: 5, kind: input, shape index: {}]   ;;  %s2021_s6 = inlined_call_operand.vmem [shape: f32[1,128], index: 6, kind: input, shape index: {}]   ;;  %s2022_s7 = inlined_call_operand.vmem [shape: f32[2,128,64], index: 7, kind: input, shape index: {}]   ;;  %s2023_s8 = inlined_call_operand.vmem [shape: f32[2,8,16], index: 8, kind: input, shape index: {}]   ;;  %s2024_s9 = inlined_call_operand.vmem [shape: f32[3,64,128], index: 9, kind: input, shape index: {}]   ;;  %s2025_s10 = inlined_call_operand.vmem [shape: f32[1,128], index: 10, kind: input, shape index: {}]   ;;  %s2026_s11 = inlined_call_operand.vmem [shape: f32[2,128,64], index: 11, kind: input, shape index: {}]   ;;  %s2027_s12 = inlined_call_operand.vmem [shape: f32[2,4,8], index: 12, kind: input, shape index: {}]   ;;  %s2028_s13 = inlined_call_operand.vmem [shape: f32[128,64], index: 13, kind: input, shape index: {}]   ;;  %s2029_s14 = inlined_call_operand.vmem [shape: f32[1,64], index: 14, kind: input, shape index: {}]   ;;  %s2030_s15 = inlined_call_operand.vmem [shape: f32[64,32], index: 15, kind: input, shape index: {}]   ;;  %s2031_s16 = inlined_call_operand.vmem [shape: f32[1,32], index: 16, kind: input, shape index: {}]   ;;  %s2032_s17 = inlined_call_operand.vmem [shape: f32[32,10], index: 17, kind: input, shape index: {}]   ;;  %s2033_s18 = inlined_call_operand.vmem [shape: f32[1,10], index: 18, kind: input, shape index: {}]   ;;  %s2034_s19 = inlined_call_operand.hbm [shape: f32[2,10], index: 19, kind: output, shape index: {}]  }
   0x1   :  { %2038 = sst [smem:[#allocation9_spill]] %s2015_s0 }
   0x2   :  { %2039 = sst [smem:[#allocation10_spill]] %s2016_s1 }
   0x3   :  { %2040 = sst [smem:[#allocation11_spill]] %s2017_s2 }
   0x4   :  { %2041 = sst [smem:[#allocation12_spill]] %s2018_s3 }
   0x5   :  { %s2042_s20 = sld [smem:[#allocation10_spill]]  ;;  %vm67_vm0 = vcmask 392192   ;;  %v1230_v5 = vmov 0.0   ;;  %vm72_vm1 = vcmask 388096  }
   0x6   :  { %68 = vst.msk [vmem:[#allocation2] sm:$0xff] %vm67_vm0, %v1230_v5  ;;  %s2043_s26 = sld [smem:[#allocation9_spill]] }
   0x7   :  { %69 = vst.msk [vmem:[#allocation2 + $0x8] sm:$0xff] %vm67_vm0, %v1230_v5  ;;  %s2044_s0 = sld [smem:[#allocation12_spill]] }
   0x8   :  { %70 = vst.msk [vmem:[#allocation2 + $0x10] sm:$0xff] %vm67_vm0, %v1230_v5 }
   0x9   :  { %71 = vst.msk [vmem:[#allocation2 + $0x18] sm:$0xff] %vm67_vm0, %v1230_v5 }
   0xa   :  { %73 = vst.msk [vmem:[#allocation2 + $0x20] sm:$0xf] %vm72_vm1, %v1230_v5 }
   0xb   :  { %v1086_v0 = vld [vmem:[%s2042_s20 + $0x88] sm:$0xff]  ;;  %v1085_v1 = vld [vmem:[%s2042_s20 + $0x80] sm:$0xff]  ;;  %v1072_v2 = vld [vmem:[%s2042_s20 + $0x58] sm:$0xff] }
   0xc   :  { %214 = vmatpush.msra.mxu2 %v1086_v0  ;;  %121 = vmatpush.msra.mxu0 %v1072_v2  ;;  %v87_v3 = vld [vmem:[%s2042_s20 + $0x28] sm:$0xff]  ;;  %v1071_v4 = vld [vmem:[%s2042_s20 + $0x50] sm:$0xff]  ;;  %v1084_v6 = vld [vmem:[%s2042_s20 + $0x78] sm:$0xff] }
   0xd   :  { %162 = vmatpush.msra.mxu1 %v87_v3  ;;  %v86_v7 = vld [vmem:[%s2042_s20 + $0x20] sm:$0xff]  ;;  %v1070_v8 = vld [vmem:[%s2042_s20 + $0x48] sm:$0xff]  ;;  %v85_v9 = vld [vmem:[%s2042_s20 + $0x18] sm:$0xff] }
   0xe   :  { %215 = vmatpush.msra.mxu2 %v1085_v1  ;;  %122 = vmatpush.msra.mxu0 %v1071_v4  ;;  %v1083_v10 = vld [vmem:[%s2042_s20 + $0x70] sm:$0xff]  ;;  %v1069_v11 = vld [vmem:[%s2042_s20 + $0x40] sm:$0xff]  ;;  %v64_v14 = vld [vmem:[%s2043_s26 + $0x8] sm:$0xff] }
   0xf   :  { %163 = vmatpush.msra.mxu1 %v86_v7  ;;  %v63_v12 = vld [vmem:[%s2043_s26] sm:$0xff]  ;;  %v84_v13 = vld [vmem:[%s2042_s20 + $0x10] sm:$0xff]  ;;  %v1082_v15 = vld [vmem:[%s2042_s20 + $0x68] sm:$0xff]  ;;  %75 = vst.msk [vmem:[#allocation2 + $0xa] sm:$0xff] %vm67_vm0, %v64_v14 }
  0x10   :  { %216 = vmatpush.msra.mxu2 %v1084_v6  ;;  %123 = vmatpush.msra.mxu0 %v1070_v8  ;;  %74 = vst.msk [vmem:[#allocation2 + $0x2] sm:$0xff] %vm67_vm0, %v63_v12  ;;  %v1068_v16 = vld [vmem:[%s2042_s20 + $0x38] sm:$0xff]  ;;  %v65_v17 = vld [vmem:[%s2043_s26 + $0x10] sm:$0xff]  ;;  %v83_v18 = vld [vmem:[%s2042_s20 + $0x8] sm:$0xff] }
  0x11   :  { %164 = vmatpush.msra.mxu1 %v85_v9  ;;  %76 = vst.msk [vmem:[#allocation2 + $0x12] sm:$0xff] %vm67_vm0, %v65_v17  ;;  %v66_v19 = vld [vmem:[%s2043_s26 + $0x18] sm:$0xff]  ;;  %v1081_v21 = vld [vmem:[%s2042_s20 + $0x60] sm:$0xff]  ;;  %v1067_v22 = vld [vmem:[%s2042_s20 + $0x30] sm:$0xff] }
  0x12   :  { %217 = vmatpush.msra.mxu2 %v1083_v10  ;;  %124 = vmatpush.msra.mxu0 %v1069_v11  ;;  %v264_v20 = vld [vmem:[%s2044_s0 + $0x78] sm:$0xff]  ;;  %v263_v23 = vld [vmem:[%s2044_s0 + $0x70] sm:$0xff]  ;;  %v82_v24 = vld [vmem:[%s2042_s20] sm:$0xff]  ;;  %77 = vst.msk [vmem:[#allocation2 + $0x1a] sm:$0xff] %vm67_vm0, %v66_v19 }
  0x13   :  { %165 = vmatpush.msra.mxu1 %v84_v13  ;;  %265 = vmatpush.msra.mxu3 %v264_v20  ;;  %v1106_v25 = vld [vmem:[%s2044_s0 + $0xf8] sm:$0xff]  ;;  %v1105_v26 = vld [vmem:[%s2044_s0 + $0xf0] sm:$0xff]  ;;  %v262_v29 = vld [vmem:[%s2044_s0 + $0x68] sm:$0xff] }
  0x14   :  { %218 = vmatpush.msra.mxu2 %v1082_v15  ;;  %125 = vmatpush.msra.mxu0 %v1068_v16  ;;  %v1104_v31 = vld [vmem:[%s2044_s0 + $0xe8] sm:$0xff]  ;;  %v261_v32 = vld [vmem:[%s2044_s0 + $0x60] sm:$0xff]  ;;  %v260_v34 = vld [vmem:[%s2044_s0 + $0x58] sm:$0xff] }
  0x15   :  { %166 = vmatpush.msra.mxu1 %v83_v18  ;;  %266 = vmatpush.msra.mxu3 %v263_v23  ;;  %v1103_v33 = vld [vmem:[%s2044_s0 + $0xe0] sm:$0xff]  ;;  %v1102_v36 = vld [vmem:[%s2044_s0 + $0xd8] sm:$0xff]  ;;  %v259_v37 = vld [vmem:[%s2044_s0 + $0x50] sm:$0xff] }
  0x16   :  { %219 = vmatpush.msra.mxu2 %v1081_v21  ;;  %126 = vmatpush.msra.mxu0 %v1067_v22  ;;  %v89_v35 = vld [vmem:[#allocation2 + $0xa] sm:$0xff] }
  0x17   :  { %167 = vmatpush.msra.mxu1 %v82_v24  ;;  %v88_v27 = vld [vmem:[#allocation2 + $0x2] sm:$0xff]  ;;  %267 = vmatpush.msra.mxu3 %v262_v29  ;;  %v1101_v40 = vld [vmem:[%s2044_s0 + $0xd0] sm:$0xff] }
  0x18   :  { %v78_v28 = vld [vmem:[#allocation2] sm:$0xff]  ;;  %311 = vmatpush.msrb.mxu0 %v1106_v25  ;;  %v182_v38 = vld [vmem:[#allocation2 + $0xc] sm:$0xff] }
  0x19   :  { %v181_v30 = vld [vmem:[#allocation2 + $0x4] sm:$0xff]  ;;  %1073 = vmatmul.msk.f32.vlgmr.msra.gmra.mxu0 %vm67_vm0, %v88_v27  ;;  %1077 = vmatmul.msk.f32.vlgmr.msra.gmra.mxu1 %vm67_vm0, %v78_v28 }
  0x1a   :  { %1087 = vmatmul.msk.f32.vlgmr.msra.gmra.mxu2 %vm67_vm0, %v181_v30  ;;  %312 = vmatpush.msrb.mxu0 %v1105_v26  ;;  %v79_v39 = vld [vmem:[#allocation2 + $0x8] sm:$0xff] }
  0x1b   :  { %268 = vmatpush.msra.mxu3 %v261_v32 }
  0x1c   :  { %313 = vmatpush.msrb.mxu0 %v1104_v31 }
  0x1d   :  { %269 = vmatpush.msra.mxu3 %v260_v34 }
  0x1e   :  { %314 = vmatpush.msrb.mxu0 %v1103_v33 }
  0x20   :  { %315 = vmatpush.msrb.mxu0 %v1102_v36 }
  0x21   :  { %24 = vsyncpa [#allocation7], 0  ;;  %1074 = vmatmul.msk.f32.gmra.mxu0 %vm67_vm0, %v89_v35  ;;  %1078 = vmatmul.msk.f32.gmra.mxu1 %vm67_vm0, %v79_v39  ;;  %v258_v41 = vld [vmem:[%s2044_s0 + $0x48] sm:$0xff]  ;;  %v257_v43 = vld [vmem:[%s2044_s0 + $0x40] sm:$0xff]  ;;  %s2045_s30 = sld [smem:[#allocation11_spill]]  ;;  %vm346_vm2 = vcmask 261120  }
  0x22   :  { %1088 = vmatmul.msk.f32.gmra.mxu2 %vm67_vm0, %v182_v38  ;;  %270 = vmatpush.msra.mxu3 %v259_v37  ;;  %v1100_v42 = vld [vmem:[%s2044_s0 + $0xc8] sm:$0xff]  ;;  %v1099_v44 = vld [vmem:[%s2044_s0 + $0xc0] sm:$0xff]  ;;  %v256_v45 = vld [vmem:[%s2044_s0 + $0x38] sm:$0xff]  ;;  %vm410_vm3 = vcmask 523264   ;;  %vm413_vm4 = vcmask 519168   ;;  %vm628_vm5 = vcmask 130048  }
  0x23   :  { %316 = vmatpush.msrb.mxu0 %v1101_v40  ;;  %v90_v46 = vld [vmem:[#allocation2 + $0x12] sm:$0xff]  ;;  %v254_v52 = vld [vmem:[%s2044_s0 + $0x28] sm:$0xff]  ;;  %v91_v54 = vld [vmem:[#allocation2 + $0x1a] sm:$0xff]  ;;  %411 = vst.msk [vmem:[#allocation3] sm:$0xff] %vm410_vm3, %v1230_v5  ;;  %vm861_vm6 = vcmask 64512   ;;  %s1231_s27 = smov [#allocation6]  }
  0x24   :  { %271 = vmatpush.msra.mxu3 %v258_v41  ;;  %v80_v47 = vld [vmem:[#allocation2 + $0x10] sm:$0xff]  ;;  %v1098_v49 = vld [vmem:[%s2044_s0 + $0xb8] sm:$0xff]  ;;  %v1096_v53 = vld [vmem:[%s2044_s0 + $0xa8] sm:$0xff]  ;;  %412 = vst.msk [vmem:[#allocation3 + $0x8] sm:$0xff] %vm410_vm3, %v1230_v5  ;;  %s1056_s28 = sshll.u32 %s1231_s27, 4  ;;  %vm1049_vm7 = vcmask 74752   ;;  %s1057_s28 = int_to_ptr.vmem [resolvable:$true] %s1056_s28 }
  0x25   :  { %317 = vmatpush.msrb.mxu0 %v1100_v42  ;;  %v183_v48 = vld [vmem:[#allocation2 + $0x14] sm:$0xff]  ;;  %v184_v56 = vld [vmem:[#allocation2 + $0x1c] sm:$0xff]  ;;  %v250_v63 = vld [vmem:[%s2044_s0 + $0x8] sm:$0xff]  ;;  %678 = vst.msk [vmem:[#allocation4] sm:$0xff] %vm410_vm3, %v1230_v5 }
  0x26   :  { %272 = vmatpush.msra.mxu3 %v257_v43  ;;  %v255_v50 = vld [vmem:[%s2044_s0 + $0x30] sm:$0xff]  ;;  %v81_v55 = vld [vmem:[#allocation2 + $0x18] sm:$0xff]  ;;  %v253_v57 = vld [vmem:[%s2044_s0 + $0x20] sm:$0xff]  ;;  %414 = vst.msk [vmem:[#allocation3 + $0x10] sm:$0xf] %vm413_vm4, %v1230_v5 }
  0x27   :  { %318 = vmatpush.msrb.mxu0 %v1099_v44  ;;  %v1097_v51 = vld [vmem:[%s2044_s0 + $0xb0] sm:$0xff]  ;;  %v1095_v58 = vld [vmem:[%s2044_s0 + $0xa0] sm:$0xff]  ;;  %v252_v59 = vld [vmem:[%s2044_s0 + $0x18] sm:$0xff]  ;;  %679 = vst.msk [vmem:[#allocation4 + $0x8] sm:$0xf] %vm413_vm4, %v1230_v5 }
  0x28   :  { %273 = vmatpush.msra.mxu3 %v256_v45  ;;  %v1094_v60 = vld [vmem:[%s2044_s0 + $0x98] sm:$0xff]  ;;  %v251_v61 = vld [vmem:[%s2044_s0 + $0x10] sm:$0xff]  ;;  %v1092_v0 = vld [vmem:[%s2044_s0 + $0x88] sm:$0xff] }
  0x29   :  { %1075 = vmatmul.msk.f32.gmra.mxu0 %vm67_vm0, %v90_v46  ;;  %1079 = vmatmul.msk.f32.gmra.mxu1 %vm67_vm0, %v80_v47  ;;  %v1093_v62 = vld [vmem:[%s2044_s0 + $0x90] sm:$0xff]  ;;  %v249_v1 = vld [vmem:[%s2044_s0] sm:$0xff]  ;;  %v1110_v47 = vld [vmem:[%s2019_s4 + $0x18] sm:$0xff] }
  0x2a   :  { %1089 = vmatmul.msk.f32.gmra.mxu2 %vm67_vm0, %v183_v48  ;;  %319 = vmatpush.msrb.mxu0 %v1098_v49  ;;  %v1091_v2 = vld [vmem:[%s2044_s0 + $0x80] sm:$0xff]  ;;  %v1109_v45 = vld [vmem:[%s2019_s4 + $0x10] sm:$0xff]  ;;  %v345_v48 = vld [vmem:[%s2019_s4 + $0x8] sm:$0xff] }
  0x2b   :  { %274 = vmatpush.msra.mxu3 %v255_v50  ;;  %v1198_v7 = vld [vmem:[%s2045_s30] ss:$0 sm:$0xff]  ;;  %v426_v49 = vld [vmem:[%s2020_s5 + $0x38] sm:$0xff] }
  0x2c   :  { %320 = vmatpush.msrb.mxu0 %v1097_v51  ;;  %v344_v46 = vld [vmem:[%s2019_s4] sm:$0xff]  ;;  %v1120_v50 = vld [vmem:[%s2020_s5 + $0x78] sm:$0xff]  ;;  %v425_v51 = vld [vmem:[%s2020_s5 + $0x30] sm:$0xff] }
  0x2d   :  { %275 = vmatpush.msra.mxu3 %v254_v52  ;;  %v1119_v52 = vld [vmem:[%s2020_s5 + $0x70] sm:$0xff]  ;;  %v561_v5 = vld [vmem:[%s2022_s7 + $0x78] sm:$0xff] }
  0x2e   :  { %321 = vmatpush.msrb.mxu0 %v1096_v53  ;;  %v424_v53 = vld [vmem:[%s2020_s5 + $0x28] sm:$0xff] }
  0x2f   :  { %276 = vmatpush.msra.mxu3 %v253_v57  ;;  %v1132_v57 = vld [vmem:[%s2020_s5 + $0xb8] sm:$0xff] }
  0x30   :  { %322 = vmatpush.msrb.mxu0 %v1095_v58  ;;  %v1131_v58 = vld [vmem:[%s2020_s5 + $0xb0] sm:$0xff] }
  0x31   :  { %1076 = vmatmul.msk.f32.gmra.mxu0 %vm67_vm0, %v91_v54  ;;  %1080 = vmatmul.msk.f32.gmra.mxu1 %vm67_vm0, %v81_v55  ;;  %v1118_v54 = vld [vmem:[%s2020_s5 + $0x68] sm:$0xff]  ;;  %v423_v55 = vld [vmem:[%s2020_s5 + $0x20] sm:$0xff] }
  0x32   :  { %1090 = vmatmul.msk.f32.gmra.mxu2 %vm67_vm0, %v184_v56  ;;  %277 = vmatpush.msra.mxu3 %v252_v59  ;;  %v1117_v56 = vld [vmem:[%s2020_s5 + $0x60] sm:$0xff]  ;;  %v422_v59 = vld [vmem:[%s2020_s5 + $0x18] sm:$0xff] }
  0x33   :  { %323 = vmatpush.msrb.mxu0 %v1094_v60  ;;  %v1116_v60 = vld [vmem:[%s2020_s5 + $0x58] sm:$0xff] }
  0x34   :  { %278 = vmatpush.msra.mxu3 %v251_v61  ;;  %v421_v61 = vld [vmem:[%s2020_s5 + $0x10] sm:$0xff] }
  0x35   :  { %324 = vmatpush.msrb.mxu0 %v1093_v62  ;;  %v1115_v62 = vld [vmem:[%s2020_s5 + $0x50] sm:$0xff] }
  0x36   :  { %279 = vmatpush.msra.mxu3 %v250_v63  ;;  %v1130_v63 = vld [vmem:[%s2020_s5 + $0xa8] sm:$0xff] }
  0x37   :  { %325 = vmatpush.msrb.mxu0 %v1092_v0  ;;  %v420_v0 = vld [vmem:[%s2020_s5 + $0x8] sm:$0xff] }
  0x38   :  { %280 = vmatpush.msra.mxu3 %v249_v1  ;;  %v1114_v1 = vld [vmem:[%s2020_s5 + $0x48] sm:$0xff] }
  0x39   :  { %326 = vmatpush.msrb.mxu0 %v1091_v2  ;;  %v1129_v2 = vld [vmem:[%s2020_s5 + $0xa0] sm:$0xff] }
  0x3a   :  { %521 = vmatpush.msrb.mxu3 %v1132_v57 }
  0x3b   :  { %562 = vmatpush.msra.mxu0 %v561_v5 }
  0x3c   :  { %522 = vmatpush.msrb.mxu3 %v1131_v58 }
  0x3e   :  { %523 = vmatpush.msrb.mxu3 %v1130_v63 }
  0x40   :  { %524 = vmatpush.msrb.mxu3 %v1129_v2 }
  0x96   :  { %v128_v3 = vpop.f32.mrf.mxu0  ;;  %v169_v4 = vpop.f32.mrf.mxu1 }
  0x97   :  { %v170_v6 = vadd.f32 %v169_v4, %v128_v3  ;;  %v419_v3 = vld [vmem:[%s2020_s5] sm:$0xff] }
  0x98   :  { %v1113_v4 = vld [vmem:[%s2020_s5 + $0x40] sm:$0xff] }
  0x9d   :  { %v221_v8 = vpop.f32.mrf.mxu2 }
  0x9e   :  { %v233_v9 = vadd.f32 %v221_v8, %v170_v6  ;;  %v131_v10 = vpop.f32.mrf.mxu0  ;;  %v172_v11 = vpop.f32.mrf.mxu1  ;;  %v1128_v6 = vld [vmem:[%s2020_s5 + $0x98] sm:$0xff]  ;;  %v1126_v8 = vld [vmem:[%s2020_s5 + $0x88] sm:$0xff] }
  0x9f   :  { %v173_v13 = vadd.f32 %v172_v11, %v131_v10  ;;  %525 = vmatpush.msrb.mxu3 %v1128_v6  ;;  %v1150_v10 = vld [vmem:[%s2022_s7 + $0xf8] sm:$0xff]  ;;  %v560_v11 = vld [vmem:[%s2022_s7 + $0x70] sm:$0xff] }
  0xa0   :  { %v241_v12 = vadd.f32 %v1198_v7, %v233_v9  ;;  %v1125_v9 = vld [vmem:[%s2020_s5 + $0x80] sm:$0xff]  ;;  %563 = vmatpush.msra.mxu0 %v560_v11  ;;  %v1152_v11 = vld [vmem:[%s2023_s8 + $0x8] sm:$0xff] }
  0xa2   :  { %v245_v14 = vmax.f32 %v241_v12, 0.0 }
  0xa4   :  { %281 = vmatmul.f32.vlgmr.msra.gmra.mxu3 %v245_v14  ;;  %327 = vmatmul.f32.vlgmr.msrb.gmra.mxu0 %v245_v14  ;;  %v559_v14 = vld [vmem:[%s2022_s7 + $0x68] sm:$0xff] }
  0xa5   :  { %v224_v15 = vpop.f32.mrf.mxu2  ;;  %564 = vmatpush.msra.mxu0 %v559_v14  ;;  %v688_v14 = vld [vmem:[%s2024_s9 + $0x30] sm:$0xff] }
  0xa6   :  { %v234_v16 = vadd.f32 %v224_v15, %v173_v13  ;;  %v134_v17 = vpop.f32.mrf.mxu0  ;;  %v175_v18 = vpop.f32.mrf.mxu1  ;;  %v1149_v13 = vld [vmem:[%s2022_s7 + $0xf0] sm:$0xff]  ;;  %v1148_v15 = vld [vmem:[%s2022_s7 + $0xe8] sm:$0xff] }
  0xa7   :  { %v176_v20 = vadd.f32 %v175_v18, %v134_v17  ;;  %v1147_v17 = vld [vmem:[%s2022_s7 + $0xe0] sm:$0xff] }
  0xa8   :  { %v242_v19 = vadd.f32 %v1198_v7, %v234_v16  ;;  %v558_v16 = vld [vmem:[%s2022_s7 + $0x60] sm:$0xff] }
  0xa9   :  { %565 = vmatpush.msra.mxu0 %v558_v16  ;;  %v1170_v16 = vld [vmem:[%s2024_s9 + $0xb0] sm:$0xff] }
  0xaa   :  { %v246_v21 = vmax.f32 %v242_v19, 0.0 }
  0xac   :  { %284 = vmatmul.f32.gmra.mxu3 %v246_v21  ;;  %330 = vmatmul.f32.gmra.mxu0 %v246_v21  ;;  %v1146_v21 = vld [vmem:[%s2022_s7 + $0xd8] sm:$0xff] }
  0xad   :  { %v227_v22 = vpop.f32.mrf.mxu2 }
  0xae   :  { %v235_v23 = vadd.f32 %v227_v22, %v176_v20  ;;  %v137_v24 = vpop.f32.mrf.mxu0  ;;  %v178_v25 = vpop.f32.mrf.mxu1  ;;  %v557_v20 = vld [vmem:[%s2022_s7 + $0x58] sm:$0xff]  ;;  %v556_v22 = vld [vmem:[%s2022_s7 + $0x50] sm:$0xff] }
  0xaf   :  { %v179_v27 = vadd.f32 %v178_v25, %v137_v24  ;;  %566 = vmatpush.msra.mxu0 %v557_v20  ;;  %v555_v24 = vld [vmem:[%s2022_s7 + $0x48] sm:$0xff] }
  0xb0   :  { %v243_v26 = vadd.f32 %v1198_v7, %v235_v23  ;;  %v1145_v23 = vld [vmem:[%s2022_s7 + $0xd0] sm:$0xff]  ;;  %v1144_v25 = vld [vmem:[%s2022_s7 + $0xc8] sm:$0xff] }
  0xb1   :  { %567 = vmatpush.msra.mxu0 %v556_v22  ;;  %v1159_v20 = vld [vmem:[%s2024_s9 + $0x68] sm:$0xff]  ;;  %v1168_v22 = vld [vmem:[%s2024_s9 + $0xa0] sm:$0xff] }
  0xb2   :  { %v247_v28 = vmax.f32 %v243_v26, 0.0 }
  0xb3   :  { %568 = vmatpush.msra.mxu0 %v555_v24  ;;  %v685_v24 = vld [vmem:[%s2024_s9 + $0x18] sm:$0xff] }
  0xb4   :  { %287 = vmatmul.f32.gmra.mxu3 %v247_v28  ;;  %333 = vmatmul.f32.gmra.mxu0 %v247_v28  ;;  %v1143_v28 = vld [vmem:[%s2022_s7 + $0xc0] sm:$0xff] }
  0xb5   :  { %v230_v29 = vpop.f32.mrf.mxu2 }
  0xb6   :  { %v236_v30 = vadd.f32 %v230_v29, %v179_v27  ;;  %v554_v27 = vld [vmem:[%s2022_s7 + $0x40] sm:$0xff] }
  0xb7   :  { %569 = vmatpush.msra.mxu0 %v554_v27  ;;  %v1166_v27 = vld [vmem:[%s2024_s9 + $0x90] sm:$0xff] }
  0xb8   :  { %v244_v31 = vadd.f32 %v1198_v7, %v236_v30  ;;  %v1127_v7 = vld [vmem:[%s2020_s5 + $0x90] sm:$0xff] }
  0xb9   :  { %526 = vmatpush.msrb.mxu3 %v1127_v7 }
  0xba   :  { %v248_v32 = vmax.f32 %v244_v31, 0.0  ;;  %v553_v31 = vld [vmem:[%s2022_s7 + $0x38] sm:$0xff] }
  0xbb   :  { %527 = vmatpush.msrb.mxu3 %v1126_v8  ;;  %570 = vmatpush.msra.mxu0 %v553_v31  ;;  %v1156_v31 = vld [vmem:[%s2024_s9 + $0x50] sm:$0xff] }
  0xbc   :  { %290 = vmatmul.f32.gmra.mxu3 %v248_v32  ;;  %336 = vmatmul.f32.gmra.mxu0 %v248_v32  ;;  %v1142_v32 = vld [vmem:[%s2022_s7 + $0xb8] sm:$0xff] }
  0xbd   :  { %528 = vmatpush.msrb.mxu3 %v1125_v9 }
 0x121   :  { %v328_v33 = vpop.f32.mrf.mxu0 }
 0x127   :  { %v282_v34 = vpop.f32.mrf.mxu3 }
 0x128   :  { %v340_v44 = vmax.f32 %v282_v34, %v328_v33 }
 0x129   :  { %v331_v35 = vpop.f32.mrf.mxu0 }
 0x12f   :  { %v285_v36 = vpop.f32.mrf.mxu3 }
 0x130   :  { %v341_v43 = vmax.f32 %v285_v36, %v331_v35  ;;  %v552_v35 = vld [vmem:[%s2022_s7 + $0x30] sm:$0xff] }
 0x131   :  { %v334_v37 = vpop.f32.mrf.mxu0  ;;  %v1141_v36 = vld [vmem:[%s2022_s7 + $0xb0] sm:$0xff]  ;;  %571 = vmatpush.msra.mxu0 %v552_v35  ;;  %v1154_v35 = vld [vmem:[%s2024_s9 + $0x40] sm:$0xff] }
 0x137   :  { %v288_v38 = vpop.f32.mrf.mxu3 }
 0x138   :  { %v342_v42 = vmax.f32 %v288_v38, %v334_v37 }
 0x139   :  { %v337_v39 = vpop.f32.mrf.mxu0 }
 0x13f   :  { %v291_v40 = vpop.f32.mrf.mxu3 }
 0x140   :  { %v343_v41 = vmax.f32 %v291_v40, %v337_v39 }
 0x142   :  { %365 = vmatpush.msrb.mxu1 %v343_v41  ;;  %397 = vmatpush.msrb.mxu2 %v343_v41  ;;  %v551_v41 = vld [vmem:[%s2022_s7 + $0x28] sm:$0xff] }
 0x143   :  { %572 = vmatpush.msra.mxu0 %v551_v41  ;;  %v1186_v41 = vld [vmem:[%s2026_s11 + $0xe8] sm:$0xff] }
 0x144   :  { %366 = vmatpush.msrb.mxu1 %v342_v42  ;;  %398 = vmatpush.msrb.mxu2 %v342_v42  ;;  %v1140_v42 = vld [vmem:[%s2022_s7 + $0xa8] sm:$0xff] }
 0x146   :  { %367 = vmatpush.msrb.mxu1 %v341_v43  ;;  %399 = vmatpush.msrb.mxu2 %v341_v43  ;;  %v550_v43 = vld [vmem:[%s2022_s7 + $0x20] sm:$0xff] }
 0x147   :  { %573 = vmatpush.msra.mxu0 %v550_v43  ;;  %v1185_v43 = vld [vmem:[%s2026_s11 + $0xe0] sm:$0xff] }
 0x148   :  { %368 = vmatpush.msrb.mxu1 %v340_v44  ;;  %400 = vmatpush.msrb.mxu2 %v340_v44  ;;  %v1139_v44 = vld [vmem:[%s2022_s7 + $0xa0] sm:$0xff] }
 0x149   :  { %1111 = vmatmul.msk.f32.vlgmr.msrb.gmra.mxu2 %vm346_vm2, %v1109_v45  ;;  %1107 = vmatmul.msk.f32.vlgmr.msrb.gmra.mxu1 %vm346_vm2, %v344_v46  ;;  %v549_v45 = vld [vmem:[%s2022_s7 + $0x18] sm:$0xff] }
 0x14a   :  { %481 = vmatpush.msra.mxu2 %v426_v49  ;;  %452 = vmatpush.msra.mxu1 %v1120_v50  ;;  %v1138_v46 = vld [vmem:[%s2022_s7 + $0x98] sm:$0xff]  ;;  %v547_v49 = vld [vmem:[%s2022_s7 + $0x8] sm:$0xff] }
 0x14b   :  { %574 = vmatpush.msra.mxu0 %v549_v45  ;;  %v1136_v50 = vld [vmem:[%s2022_s7 + $0x88] sm:$0xff]  ;;  %v1184_v45 = vld [vmem:[%s2026_s11 + $0xd8] sm:$0xff] }
 0x14c   :  { %482 = vmatpush.msra.mxu2 %v425_v51  ;;  %453 = vmatpush.msra.mxu1 %v1119_v52  ;;  %v546_v51 = vld [vmem:[%s2022_s7] sm:$0xff] }
 0x14d   :  { %v1135_v52 = vld [vmem:[%s2022_s7 + $0x80] sm:$0xff] }
 0x14e   :  { %483 = vmatpush.msra.mxu2 %v424_v53  ;;  %454 = vmatpush.msra.mxu1 %v1118_v54 }
 0x150   :  { %484 = vmatpush.msra.mxu2 %v423_v55  ;;  %455 = vmatpush.msra.mxu1 %v1117_v56  ;;  %v1199_v56 = vld [vmem:[%s2021_s6] ss:$0 sm:$0xff] }
 0x151   :  { %1112 = vmatmul.msk.f32.gmra.mxu2 %vm346_vm2, %v1110_v47  ;;  %1108 = vmatmul.msk.f32.gmra.mxu1 %vm346_vm2, %v345_v48  ;;  %v548_v47 = vld [vmem:[%s2022_s7 + $0x10] sm:$0xff] }
 0x152   :  { %485 = vmatpush.msra.mxu2 %v422_v59  ;;  %456 = vmatpush.msra.mxu1 %v1116_v60  ;;  %v1137_v48 = vld [vmem:[%s2022_s7 + $0x90] sm:$0xff] }
 0x153   :  { %575 = vmatpush.msra.mxu0 %v548_v47  ;;  %v1183_v47 = vld [vmem:[%s2026_s11 + $0xd0] sm:$0xff] }
 0x154   :  { %486 = vmatpush.msra.mxu2 %v421_v61  ;;  %457 = vmatpush.msra.mxu1 %v1115_v62 }
 0x155   :  { %576 = vmatpush.msra.mxu0 %v547_v49  ;;  %v1182_v49 = vld [vmem:[%s2026_s11 + $0xc8] sm:$0xff] }
 0x156   :  { %487 = vmatpush.msra.mxu2 %v420_v0  ;;  %458 = vmatpush.msra.mxu1 %v1114_v1 }
 0x157   :  { %577 = vmatpush.msra.mxu0 %v546_v51  ;;  %v1181_v51 = vld [vmem:[%s2026_s11 + $0xc0] sm:$0xff] }
 0x158   :  { %488 = vmatpush.msra.mxu2 %v419_v3  ;;  %459 = vmatpush.msra.mxu1 %v1113_v4 }
 0x15a   :  { %602 = vmatpush.msrb.mxu1 %v1150_v10  ;;  %v627_v10 = vld [vmem:[%s2023_s8] sm:$0xff] }
 0x15c   :  { %603 = vmatpush.msrb.mxu1 %v1149_v13  ;;  %v1171_v13 = vld [vmem:[%s2024_s9 + $0xb8] sm:$0xff] }
 0x15e   :  { %604 = vmatpush.msrb.mxu1 %v1148_v15  ;;  %v1161_v15 = vld [vmem:[%s2024_s9 + $0x78] sm:$0xff] }
 0x15f   :  { %711 = vmatpush.msrb.mxu0 %v1161_v15 }
 0x160   :  { %605 = vmatpush.msrb.mxu1 %v1147_v17  ;;  %v1160_v17 = vld [vmem:[%s2024_s9 + $0x70] sm:$0xff] }
 0x161   :  { %712 = vmatpush.msrb.mxu0 %v1160_v17 }
 0x162   :  { %606 = vmatpush.msrb.mxu1 %v1146_v21  ;;  %v686_v21 = vld [vmem:[%s2024_s9 + $0x20] sm:$0xff] }
 0x163   :  { %713 = vmatpush.msrb.mxu0 %v1159_v20 }
 0x164   :  { %607 = vmatpush.msrb.mxu1 %v1145_v23  ;;  %v1158_v23 = vld [vmem:[%s2024_s9 + $0x60] sm:$0xff] }
 0x165   :  { %714 = vmatpush.msrb.mxu0 %v1158_v23  ;;  %v929_v23 = vld [vmem:[%s2028_s13 + $0x78] sm:$0xff] }
 0x166   :  { %608 = vmatpush.msrb.mxu1 %v1144_v25  ;;  %v1167_v25 = vld [vmem:[%s2024_s9 + $0x98] sm:$0xff] }
 0x168   :  { %609 = vmatpush.msrb.mxu1 %v1143_v28  ;;  %v1157_v28 = vld [vmem:[%s2024_s9 + $0x58] sm:$0xff] }
 0x169   :  { %715 = vmatpush.msrb.mxu0 %v1157_v28  ;;  %v918_v28 = vld [vmem:[%s2028_s13 + $0x28] sm:$0xff] }
 0x16a   :  { %610 = vmatpush.msrb.mxu1 %v1142_v32  ;;  %v682_v32 = vld [vmem:[%s2024_s9] sm:$0xff] }
 0x16b   :  { %716 = vmatpush.msrb.mxu0 %v1156_v31  ;;  %v925_v31 = vld [vmem:[%s2028_s13 + $0x58] sm:$0xff] }
 0x16c   :  { %611 = vmatpush.msrb.mxu1 %v1141_v36  ;;  %v801_v36 = vld [vmem:[%s2026_s11 + $0x78] sm:$0xff] }
 0x16e   :  { %612 = vmatpush.msrb.mxu1 %v1140_v42  ;;  %v798_v42 = vld [vmem:[%s2026_s11 + $0x60] sm:$0xff] }
 0x170   :  { %613 = vmatpush.msrb.mxu1 %v1139_v44  ;;  %v797_v44 = vld [vmem:[%s2026_s11 + $0x58] sm:$0xff] }
 0x172   :  { %614 = vmatpush.msrb.mxu1 %v1138_v46  ;;  %v796_v46 = vld [vmem:[%s2026_s11 + $0x50] sm:$0xff] }
 0x174   :  { %615 = vmatpush.msrb.mxu1 %v1137_v48  ;;  %v795_v48 = vld [vmem:[%s2026_s11 + $0x48] sm:$0xff] }
 0x176   :  { %616 = vmatpush.msrb.mxu1 %v1136_v50  ;;  %v794_v50 = vld [vmem:[%s2026_s11 + $0x40] sm:$0xff] }
 0x178   :  { %617 = vmatpush.msrb.mxu1 %v1135_v52  ;;  %v793_v52 = vld [vmem:[%s2026_s11 + $0x38] sm:$0xff] }
 0x1c6   :  { %v370_v12 = vpop.f32.mrf.mxu1 }
 0x1cc   :  { %v402_v18 = vpop.f32.mrf.mxu2 }
 0x1cd   :  { %v408_v19 = vmax.f32 %v370_v12, %v402_v18  ;;  %v689_v12 = vld [vmem:[%s2024_s9 + $0x38] sm:$0xff]  ;;  %v687_v18 = vld [vmem:[%s2024_s9 + $0x28] sm:$0xff] }
 0x1ce   :  { %v373_v26 = vpop.f32.mrf.mxu1 }
 0x1cf   :  { %415 = vst.msk [vmem:[#allocation3 + $0x2] sm:$0xff] %vm410_vm3, %v408_v19  ;;  %v1169_v19 = vld [vmem:[%s2024_s9 + $0xa8] sm:$0xff] }
 0x1d4   :  { %v405_v29 = vpop.f32.mrf.mxu2 }
 0x1d5   :  { %v409_v30 = vmax.f32 %v373_v26, %v405_v29  ;;  %v684_v26 = vld [vmem:[%s2024_s9 + $0x10] sm:$0xff]  ;;  %v683_v29 = vld [vmem:[%s2024_s9 + $0x8] sm:$0xff] }
 0x1d6   :  { %v417_v33 = vld [vmem:[#allocation3] sm:$0xff] }
 0x1d7   :  { %v427_v34 = vld [vmem:[#allocation3 + $0x2] sm:$0xff]  ;;  %416 = vst.msk [vmem:[#allocation3 + $0xa] sm:$0xff] %vm410_vm3, %v409_v30  ;;  %1123 = vmatmul.msk.f32.vlgmr.msra.gmra.mxu2 %vm410_vm3, %v417_v33 }
 0x1d8   :  { %1121 = vmatmul.msk.f32.vlgmr.msra.gmra.mxu1 %vm410_vm3, %v427_v34  ;;  %v1165_v30 = vld [vmem:[%s2024_s9 + $0x88] sm:$0xff]  ;;  %v1164_v34 = vld [vmem:[%s2024_s9 + $0x80] sm:$0xff] }
 0x1d9   :  { %v1155_v33 = vld [vmem:[%s2024_s9 + $0x48] sm:$0xff] }
 0x1da   :  { %717 = vmatpush.msrb.mxu0 %v1155_v33  ;;  %v924_v33 = vld [vmem:[%s2028_s13 + $0x50] sm:$0xff] }
 0x1dc   :  { %718 = vmatpush.msrb.mxu0 %v1154_v35  ;;  %v923_v35 = vld [vmem:[%s2028_s13 + $0x48] sm:$0xff] }
 0x1de   :  { %v496_v37 = vld [vmem:[#allocation3 + $0x4] sm:$0xff]  ;;  %v497_v40 = vld [vmem:[#allocation3 + $0xc] sm:$0xff] }
 0x1df   :  { %v418_v38 = vld [vmem:[#allocation3 + $0x8] sm:$0xff]  ;;  %1133 = vmatmul.msk.f32.vlgmr.msrb.gmra.mxu3 %vm410_vm3, %v496_v37  ;;  %v1188_v37 = vld [vmem:[%s2026_s11 + $0xf8] sm:$0xff] }
 0x1e0   :  { %1124 = vmatmul.msk.f32.gmra.mxu2 %vm410_vm3, %v418_v38  ;;  %v428_v39 = vld [vmem:[#allocation3 + $0xa] sm:$0xff]  ;;  %839 = vmatpush.msra.mxu1 %v1188_v37  ;;  %v922_v37 = vld [vmem:[%s2028_s13 + $0x40] sm:$0xff] }
 0x1e1   :  { %1122 = vmatmul.msk.f32.gmra.mxu1 %vm410_vm3, %v428_v39  ;;  %v800_v38 = vld [vmem:[%s2026_s11 + $0x70] sm:$0xff] }
 0x1e2   :  { %v1187_v39 = vld [vmem:[%s2026_s11 + $0xf0] sm:$0xff] }
 0x1e3   :  { %840 = vmatpush.msra.mxu1 %v1187_v39  ;;  %v989_v39 = vld [vmem:[%s2030_s15 + $0x38] sm:$0xff] }
 0x1e5   :  { %841 = vmatpush.msra.mxu1 %v1186_v41  ;;  %v987_v41 = vld [vmem:[%s2030_s15 + $0x28] sm:$0xff] }
 0x1e7   :  { %1134 = vmatmul.msk.f32.gmra.mxu3 %vm410_vm3, %v497_v40  ;;  %v799_v40 = vld [vmem:[%s2026_s11 + $0x68] sm:$0xff]  ;;  %842 = vmatpush.msra.mxu1 %v1185_v43 }
 0x1e9   :  { %843 = vmatpush.msra.mxu1 %v1184_v45 }
 0x1eb   :  { %844 = vmatpush.msra.mxu1 %v1183_v47 }
 0x1ed   :  { %845 = vmatpush.msra.mxu1 %v1182_v49  ;;  %v984_v49 = vld [vmem:[%s2030_s15 + $0x10] sm:$0xff] }
 0x1ef   :  { %846 = vmatpush.msra.mxu1 %v1181_v51  ;;  %v982_v51 = vld [vmem:[%s2030_s15] sm:$0xff] }
 0x255   :  { %v461_v54 = vpop.f32.mrf.mxu1 }
 0x25a   :  { %v490_v53 = vpop.f32.mrf.mxu2 }
 0x25b   :  { %v491_v55 = vadd.f32 %v490_v53, %v461_v54  ;;  %v1180_v53 = vld [vmem:[%s2026_s11 + $0xb8] sm:$0xff]  ;;  %v792_v54 = vld [vmem:[%s2026_s11 + $0x30] sm:$0xff] }
 0x25c   :  { %847 = vmatpush.msra.mxu1 %v1180_v53  ;;  %v1020_v53 = vld [vmem:[%s2032_s17 + $0x10] sm:$0xff] }
 0x25e   :  { %v464_v62 = vpop.f32.mrf.mxu1 }
 0x262   :  { %v530_v57 = vpop.f32.mrf.mxu3 }
 0x263   :  { %v536_v58 = vadd.f32 %v530_v57, %v491_v55  ;;  %v493_v60 = vpop.f32.mrf.mxu2  ;;  %v1179_v55 = vld [vmem:[%s2026_s11 + $0xb0] sm:$0xff]  ;;  %v1178_v57 = vld [vmem:[%s2026_s11 + $0xa8] sm:$0xff] }
 0x264   :  { %v494_v63 = vadd.f32 %v493_v60, %v464_v62  ;;  %848 = vmatpush.msra.mxu1 %v1179_v55 }
 0x265   :  { %v542_v59 = vadd.f32 %v1199_v56, %v536_v58 }
 0x266   :  { %849 = vmatpush.msra.mxu1 %v1178_v57 }
 0x267   :  { %v544_v61 = vmax.f32 %v542_v59, 0.0 }
 0x269   :  { %578 = vmatmul.f32.vlgmr.msra.gmra.mxu0 %v544_v61  ;;  %618 = vmatmul.f32.vlgmr.msrb.gmra.mxu1 %v544_v61 }
 0x26a   :  { %v533_v0 = vpop.f32.mrf.mxu3  ;;  %802 = vmatpush.msra.mxu0 %v801_v36  ;;  %v914_v36 = vld [vmem:[%s2028_s13 + $0x8] sm:$0xff] }
 0x26b   :  { %v537_v1 = vadd.f32 %v533_v0, %v494_v63  ;;  %v790_v0 = vld [vmem:[%s2026_s11 + $0x20] sm:$0xff] }
 0x26c   :  { %803 = vmatpush.msra.mxu0 %v800_v38  ;;  %v913_v38 = vld [vmem:[%s2028_s13] sm:$0xff] }
 0x26d   :  { %v543_v2 = vadd.f32 %v1199_v56, %v537_v1  ;;  %v791_v56 = vld [vmem:[%s2026_s11 + $0x28] sm:$0xff]  ;;  %v1177_v1 = vld [vmem:[%s2026_s11 + $0xa0] sm:$0xff] }
 0x26e   :  { %804 = vmatpush.msra.mxu0 %v799_v40  ;;  %850 = vmatpush.msra.mxu1 %v1177_v1  ;;  %v988_v40 = vld [vmem:[%s2030_s15 + $0x30] sm:$0xff] }
 0x26f   :  { %v545_v3 = vmax.f32 %v543_v2, 0.0  ;;  %v789_v2 = vld [vmem:[%s2026_s11 + $0x18] sm:$0xff] }
 0x270   :  { %805 = vmatpush.msra.mxu0 %v798_v42  ;;  %v986_v42 = vld [vmem:[%s2030_s15 + $0x20] sm:$0xff] }
 0x271   :  { %581 = vmatmul.f32.gmra.mxu0 %v545_v3  ;;  %621 = vmatmul.f32.gmra.mxu1 %v545_v3  ;;  %v1176_v3 = vld [vmem:[%s2026_s11 + $0x98] sm:$0xff] }
 0x272   :  { %806 = vmatpush.msra.mxu0 %v797_v44  ;;  %851 = vmatpush.msra.mxu1 %v1176_v3 }
 0x274   :  { %807 = vmatpush.msra.mxu0 %v796_v46 }
 0x276   :  { %808 = vmatpush.msra.mxu0 %v795_v48  ;;  %v985_v48 = vld [vmem:[%s2030_s15 + $0x18] sm:$0xff] }
 0x278   :  { %809 = vmatpush.msra.mxu0 %v794_v50  ;;  %v983_v50 = vld [vmem:[%s2030_s15 + $0x8] sm:$0xff] }
 0x27a   :  { %810 = vmatpush.msra.mxu0 %v793_v52  ;;  %v1021_v52 = vld [vmem:[%s2032_s17 + $0x18] sm:$0xff] }
 0x27c   :  { %811 = vmatpush.msra.mxu0 %v792_v54  ;;  %v1201_v54 = vld [vmem:[%s2029_s14] ss:$0 sm:$0xff] }
 0x27e   :  { %812 = vmatpush.msra.mxu0 %v791_v56 }
 0x280   :  { %813 = vmatpush.msra.mxu0 %v790_v0 }
 0x282   :  { %814 = vmatpush.msra.mxu0 %v789_v2  ;;  %v1203_v2 = vld [vmem:[%s2033_s18] ss:$0 sm:$0xff] }
 0x2e6   :  { %v579_v4 = vpop.f32.mrf.mxu0  ;;  %v619_v6 = vpop.f32.mrf.mxu1 }
 0x2e7   :  { %v625_v5 = vmax.f32 %v579_v4, %v619_v6  ;;  %v788_v4 = vld [vmem:[%s2026_s11 + $0x10] sm:$0xff] }
 0x2e8   :  { %v1175_v6 = vld [vmem:[%s2026_s11 + $0x90] sm:$0xff]  ;;  %815 = vmatpush.msra.mxu0 %v788_v4 }
 0x2e9   :  { %852 = vmatpush.msra.mxu1 %v1175_v6 }
 0x2ee   :  { %v582_v7 = vpop.f32.mrf.mxu0  ;;  %v622_v8 = vpop.f32.mrf.mxu1 }
 0x2ef   :  { %v626_v9 = vmax.f32 %v582_v7, %v622_v8  ;;  %v787_v7 = vld [vmem:[%s2026_s11 + $0x8] sm:$0xff] }
 0x2f0   :  { %v1174_v8 = vld [vmem:[%s2026_s11 + $0x88] sm:$0xff]  ;;  %816 = vmatpush.msra.mxu0 %v787_v7 }
 0x2f1   :  { %646 = vmatpush.msrb.mxu2 %v626_v9  ;;  %671 = vmatpush.msra.mxu3 %v626_v9  ;;  %v786_v9 = vld [vmem:[%s2026_s11] sm:$0xff] }
 0x2f2   :  { %853 = vmatpush.msra.mxu1 %v1174_v8  ;;  %817 = vmatpush.msra.mxu0 %v786_v9 }
 0x2f3   :  { %647 = vmatpush.msrb.mxu2 %v625_v5  ;;  %672 = vmatpush.msra.mxu3 %v625_v5  ;;  %v1173_v5 = vld [vmem:[%s2026_s11 + $0x80] sm:$0xff] }
 0x2f4   :  { %1151 = vmatmul.msk.f32.vlgmr.msrb.gmra.mxu2 %vm628_vm5, %v627_v10  ;;  %1153 = vmatmul.msk.f32.vlgmr.msra.gmra.mxu3 %vm628_vm5, %v1152_v11 }
 0x2f5   :  { %734 = vmatpush.msra.mxu2 %v689_v12  ;;  %767 = vmatpush.msrb.mxu3 %v1171_v13  ;;  %v1200_v13 = vld [vmem:[%s2025_s10] ss:$0 sm:$0xff] }
 0x2f6   :  { %854 = vmatpush.msra.mxu1 %v1173_v5 }
 0x2f7   :  { %735 = vmatpush.msra.mxu2 %v688_v14  ;;  %768 = vmatpush.msrb.mxu3 %v1170_v16 }
 0x2f9   :  { %736 = vmatpush.msra.mxu2 %v687_v18  ;;  %769 = vmatpush.msrb.mxu3 %v1169_v19 }
 0x2fb   :  { %737 = vmatpush.msra.mxu2 %v686_v21  ;;  %770 = vmatpush.msrb.mxu3 %v1168_v22  ;;  %v860_v21 = vld [vmem:[%s2027_s12] sm:$0xf]  ;;  %v1190_v22 = vld [vmem:[%s2027_s12 + $0x4] sm:$0xf] }
 0x2fd   :  { %738 = vmatpush.msra.mxu2 %v685_v24  ;;  %771 = vmatpush.msrb.mxu3 %v1167_v25  ;;  %v920_v24 = vld [vmem:[%s2028_s13 + $0x38] sm:$0xff]  ;;  %v928_v25 = vld [vmem:[%s2028_s13 + $0x70] sm:$0xff] }
 0x2ff   :  { %739 = vmatpush.msra.mxu2 %v684_v26  ;;  %772 = vmatpush.msrb.mxu3 %v1166_v27  ;;  %v919_v26 = vld [vmem:[%s2028_s13 + $0x30] sm:$0xff]  ;;  %v927_v27 = vld [vmem:[%s2028_s13 + $0x68] sm:$0xff] }
 0x301   :  { %740 = vmatpush.msra.mxu2 %v683_v29  ;;  %773 = vmatpush.msrb.mxu3 %v1165_v30  ;;  %v926_v29 = vld [vmem:[%s2028_s13 + $0x60] sm:$0xff] }
 0x302   :  { %v917_v30 = vld [vmem:[%s2028_s13 + $0x20] sm:$0xff] }
 0x303   :  { %741 = vmatpush.msra.mxu2 %v682_v32  ;;  %774 = vmatpush.msrb.mxu3 %v1164_v34  ;;  %v916_v32 = vld [vmem:[%s2028_s13 + $0x18] sm:$0xff]  ;;  %v915_v34 = vld [vmem:[%s2028_s13 + $0x10] sm:$0xff] }
 0x377   :  { %v649_v58 = vpop.f32.mrf.mxu2  ;;  %v674_v59 = vpop.f32.mrf.mxu3 }
 0x378   :  { %v677_v60 = vmax.f32 %v649_v58, %v674_v59 }
 0x37a   :  { %680 = vst.msk [vmem:[#allocation4 + $0x2] sm:$0xff] %vm410_vm3, %v677_v60  ;;  %v1019_v60 = vld [vmem:[%s2032_s17 + $0x8] sm:$0xff] }
 0x381   :  { %v681_v61 = vld [vmem:[#allocation4] sm:$0xff] }
 0x382   :  { %v746_v62 = vld [vmem:[#allocation4 + $0x4] sm:$0xff]  ;;  %1163 = vmatmul.msk.f32.vlgmr.msra.gmra.mxu2 %vm410_vm3, %v681_v61 }
 0x383   :  { %v690_v63 = vld [vmem:[#allocation4 + $0x2] sm:$0xff]  ;;  %1172 = vmatmul.msk.f32.vlgmr.msrb.gmra.mxu3 %vm410_vm3, %v746_v62  ;;  %v1202_v62 = vld [vmem:[%s2031_s16] ss:$0 sm:$0xff] }
 0x384   :  { %1162 = vmatmul.msk.f32.vlgmr.msrb.gmra.mxu0 %vm410_vm3, %v690_v63  ;;  %v1018_v61 = vld [vmem:[%s2032_s17] sm:$0xff]  ;;  %s1058_s17 = sshll.u32 %s2034_s19, 4  ;;  %s1059_s17 = int_to_ptr.hbm [resolvable:$true] %s1058_s17 }
 0x401   :  { %v720_v10 = vpop.f32.mrf.mxu0 }
 0x405   :  { %v743_v11 = vpop.f32.mrf.mxu2 }
 0x406   :  { %v744_v12 = vadd.f32 %v743_v11, %v720_v10  ;;  %v776_v14 = vpop.f32.mrf.mxu3 }
 0x408   :  { %v779_v15 = vadd.f32 %v776_v14, %v744_v12 }
 0x40a   :  { %v784_v16 = vadd.f32 %v1200_v13, %v779_v15 }
 0x40c   :  { %v785_v17 = vmax.f32 %v784_v16, 0.0 }
 0x40e   :  { %818 = vmatmul.f32.vlgmr.msra.gmra.mxu0 %v785_v17  ;;  %855 = vmatmul.f32.vlgmr.msra.gmra.mxu1 %v785_v17 }
 0x48b   :  { %v819_v18 = vpop.f32.mrf.mxu0  ;;  %v856_v19 = vpop.f32.mrf.mxu1 }
 0x48c   :  { %v859_v20 = vmax.f32 %v819_v18, %v856_v19 }
 0x48e   :  { %880 = vmatpush.msrb.mxu2 %v859_v20  ;;  %905 = vmatpush.msra.mxu3 %v859_v20 }
 0x48f   :  { %1189 = vmatmul.msk.f32.vlgmr.msrb.gmra.mxu2 %vm861_vm6, %v860_v21  ;;  %1191 = vmatmul.msk.f32.vlgmr.msra.gmra.mxu3 %vm861_vm6, %v1190_v22 }
 0x490   :  { %941 = vmatpush.msra.mxu2 %v929_v23  ;;  %964 = vmatpush.msrb.mxu3 %v920_v24 }
 0x492   :  { %942 = vmatpush.msra.mxu2 %v928_v25  ;;  %965 = vmatpush.msrb.mxu3 %v919_v26 }
 0x494   :  { %943 = vmatpush.msra.mxu2 %v927_v27  ;;  %966 = vmatpush.msrb.mxu3 %v918_v28 }
 0x496   :  { %944 = vmatpush.msra.mxu2 %v926_v29  ;;  %967 = vmatpush.msrb.mxu3 %v917_v30 }
 0x498   :  { %945 = vmatpush.msra.mxu2 %v925_v31  ;;  %968 = vmatpush.msrb.mxu3 %v916_v32 }
 0x49a   :  { %946 = vmatpush.msra.mxu2 %v924_v33  ;;  %969 = vmatpush.msrb.mxu3 %v915_v34 }
 0x49c   :  { %947 = vmatpush.msra.mxu2 %v923_v35  ;;  %970 = vmatpush.msrb.mxu3 %v914_v36 }
 0x49e   :  { %948 = vmatpush.msra.mxu2 %v922_v37  ;;  %971 = vmatpush.msrb.mxu3 %v913_v38 }
 0x4a0   :  { %1005 = vmatpush.msrb.mxu2 %v989_v39  ;;  %1041 = vmatpush.msra.mxu3 %v1021_v52 }
 0x4a2   :  { %1006 = vmatpush.msrb.mxu2 %v988_v40  ;;  %1042 = vmatpush.msra.mxu3 %v1020_v53 }
 0x4a4   :  { %1007 = vmatpush.msrb.mxu2 %v987_v41  ;;  %1043 = vmatpush.msra.mxu3 %v1019_v60 }
 0x4a6   :  { %1008 = vmatpush.msrb.mxu2 %v986_v42  ;;  %1044 = vmatpush.msra.mxu3 %v1018_v61 }
 0x4a8   :  { %1009 = vmatpush.msrb.mxu2 %v985_v48 }
 0x4aa   :  { %1010 = vmatpush.msrb.mxu2 %v984_v49 }
 0x4ac   :  { %1011 = vmatpush.msrb.mxu2 %v983_v50 }
 0x4ae   :  { %1012 = vmatpush.msrb.mxu2 %v982_v51 }
 0x512   :  { %v882_v43 = vpop.f32.mrf.mxu2  ;;  %v907_v44 = vpop.f32.mrf.mxu3 }
 0x513   :  { %v910_v45 = vmax.f32 %v882_v43, %v907_v44 }
 0x515   :  { %911 = vst.msk [vmem:[#allocation5] sm:$0xf] %vm413_vm4, %v910_v45 }
 0x51c   :  { %v921_v46 = vld [vmem:[#allocation5 + $0x2] sm:$0x3]  ;;  %v912_v47 = vld [vmem:[#allocation5] sm:$0x3] }
 0x51d   :  { %1192 = vmatmul.msk.f32.vlgmr.msra.gmra.mxu2 %vm410_vm3, %v921_v46  ;;  %1193 = vmatmul.msk.f32.vlgmr.msrb.gmra.mxu3 %vm410_vm3, %v912_v47 }
 0x5a0   :  { %v950_v55 = vpop.f32.mrf.mxu2  ;;  %v973_v56 = vpop.f32.mrf.mxu3 }
 0x5a1   :  { %v974_v57 = vadd.f32 %v973_v56, %v950_v55 }
 0x5a3   :  { %v980_v58 = vadd.f32 %v1201_v54, %v974_v57 }
 0x5a5   :  { %v981_v59 = vmax.f32 %v980_v58, 0.0 }
 0x5a7   :  { %1194 = vmatmul.msk.f32.vlgmr.msrb.gmra.mxu2 %vm410_vm3, %v981_v59 }
 0x62a   :  { %v1014_v63 = vpop.f32.mrf.mxu2 }
 0x62b   :  { %v1015_v0 = vadd.f32 %v1202_v62, %v1014_v63 }
 0x62d   :  { %v1017_v1 = vmax.f32 %v1015_v0, 0.0 }
 0x62f   :  { %1195 = vmatmul.msk.f32.vlgmr.msra.gmra.mxu3 %vm346_vm2, %v1017_v1 }
 0x6b2   :  { %v1046_v3 = vpop.f32.mrf.mxu3 }
 0x6b3   :  { %v1047_v4 = vadd.f32 %v1203_v2, %v1046_v3 }
 0x6b5   :  { %1050 = vst.msk [vmem:[#allocation6] sm:$0x3] %vm1049_vm7, %v1047_v4 }
 0x6b6   :  { %1061 = dma.vmem_to_hbm [thread:$0]  %s1057_s28, 32, %s1059_s17, [#allocation7]  }
 0x6b7   :  { %1228 = dma.done.wait [#allocation7], 32  }
 0x6b8   :  { %1229 = vsyncadd [#allocation7], 4294967264 }
 0x6b9   :  { %1066 = vsyncpa [#allocation7], 1 }

</bundles_post_ra>
